<compile_context>
chip_gen: v5e
topology: v5e:2x2
jax: 0.10.0
libtpu: 0.0.40
codegen_flags: <defaults>
</compile_context>

<pallas_src>
import functools

import jax
import jax.numpy as jnp
from jax.experimental import pallas as pl
from jax.experimental.pallas import tpu as pltpu

# static hyper-parameters implied by the PyTorch module
K1 = 5      # conv1 kernel size
C1 = 2      # conv1 output channels
K2 = 8      # conv2 kernel size
C2 = 3      # conv2 output channels (== GRU input size)
NCLS = 6    # fc1 output size
GW = 128    # per-gate lane padding (one lane tile) for the GRU


def _vmem():
    return pl.BlockSpec(memory_space=pltpu.MemorySpace.VMEM)


def _rup8(n):
    return (n + 7) // 8 * 8


def _derive(B, Hin, Win):
    """Static geometry + row offsets of the packed 'aux' operand."""
    OH1, OW1 = Hin - K1 + 1, Win - K1 + 1
    PH, PW = OH1 // 2, OW1 // 2
    T = PW - K2 + 1
    r_pwv = 0                         # (PW*B, OW1*B)  width-pool matrix
    r_mh = _rup8(PW * B)              # (C1*OH1, C1*PH) height-pool / regroup matrix
    r_b1 = r_mh + C1 * OH1            # (1, C1*OH1)    conv1 bias per lane
    r_b2 = r_b1 + 1                   # (1, C2)        conv2 bias
    r_w2 = _rup8(r_b2 + 1)            # (C1*K2*K2, C2) flattened conv2 weights
    rows = r_w2 + C1 * K2 * K2
    cols = max(OW1 * B, C1 * OH1)
    return dict(OH1=OH1, OW1=OW1, PH=PH, PW=PW, T=T, r_pwv=r_pwv, r_mh=r_mh,
                r_b1=r_b1, r_b2=r_b2, r_w2=r_w2, rows=rows, cols=cols)


# ---------------------------------------------------------------------------
# Fused Pallas kernel
# ---------------------------------------------------------------------------
def _crnn_kernel(x_ref, w1m_ref, aux_ref, gp_ref, o_ref, *, hid, batch):
    """Whole CRNN forward, fully batched over B.

    x_ref  : (Win*B, Hin) f32 VMEM  batch-interleaved input, row = w*B + b, lane = h
    w1m_ref: (K1, Hin, C1*OH1) f32  conv1 height-contraction tables (one per kernel col)
    aux_ref: (rows, cols)  f32      pooling matrices + conv biases + conv2 weights
    gp_ref : (C2+3+2*hid, 3*GW) f32 GRU / FC parameters, gates padded to 128 lanes
    o_ref  : (B, NCLS)     f32      output logits
    """
    f32 = jnp.float32
    WB, Hin = x_ref.shape
    Win = WB // batch
    d = _derive(batch, Hin, Win)
    OW1, OH1, PW, PH, T = d["OW1"], d["OH1"], d["PW"], d["PH"], d["T"]

    # ---- conv1 (1->C1, K1xK1) + ReLU : K1 accumulated MXU matmuls ------------------
    # y1[(ow*B+b), c*OH1+oh] = relu(b1[c] + sum_{u,v} w1[c,u,v] * x[b, oh+u, ow+v])
    xin = x_ref[...]                                        # (Win*B, Hin)
    w1m = w1m_ref[...]                                      # (K1, Hin, C1*OH1)
    acc1 = jnp.dot(xin[0:OW1 * batch, :], w1m[0], preferred_element_type=f32)
    for v in range(1, K1):
        acc1 = acc1 + jnp.dot(xin[v * batch:(v + OW1) * batch, :], w1m[v],
                              preferred_element_type=f32)
    b1row = aux_ref[d["r_b1"]:d["r_b1"] + 1, 0:C1 * OH1]    # (1, C1*OH1)
    y1 = jnp.maximum(acc1 + b1row, 0.0)                     # (OW1*B, C1*OH1)

    # ---- AvgPool2d(2,2): width pool (rows) + height pool / channel regroup (lanes) --
    pwv2 = aux_ref[d["r_pwv"]:d["r_pwv"] + PW * batch, 0:OW1 * batch]   # (PW*B, OW1*B)
    mh = aux_ref[d["r_mh"]:d["r_mh"] + C1 * OH1, 0:C1 * PH]             # (C1*OH1, C1*PH)
    pooled = jnp.dot(jnp.dot(pwv2, y1, preferred_element_type=f32), mh,
                     preferred_element_type=f32)            # (PW*B, C1*PH), rows (m,b)

    # ---- conv2 (C1->C2, K2xK2) + ReLU : ONE (T*B, C1*K2*K2=128) @ (128, C2) matmul --
    patches = jnp.concatenate(
        [pooled[j * batch:(j + T) * batch, :] for j in range(K2)], axis=1)  # (T*B, 128)
    w2f = aux_ref[d["r_w2"]:d["r_w2"] + C1 * K2 * K2, 0:C2]               # (128, C2)
    b2row = aux_ref[d["r_b2"]:d["r_b2"] + 1, 0:C2]                        # (1, C2)
    seq = jnp.maximum(jnp.dot(patches, w2f, preferred_element_type=f32) + b2row, 0.0)

    # ---- GRU: gates padded to 128-lane tiles; input projection hoisted --------------
    wih = gp_ref[0:C2, :]                                   # (C2, 3*GW)
    bx = gp_ref[C2:C2 + 1, :]                               # (1, 3*GW)  b_ir+b_hr|b_iz+b_hz|b_in
    whh = gp_ref[C2 + 1:C2 + 1 + hid, :]                    # (hid, 3*GW)
    bh = gp_ref[C2 + 1 + hid:C2 + 2 + hid, :]               # (1, 3*GW)  0|0|b_hn
    wfc = gp_ref[C2 + 2 + hid:C2 + 2 + 2 * hid, 0:NCLS]     # (hid, NCLS)
    bfc = gp_ref[C2 + 2 + 2 * hid:C2 + 3 + 2 * hid, 0:NCLS]  # (1, NCLS)

    xproj = jnp.dot(seq, wih, preferred_element_type=f32) + bx   # (T*B, 3*GW)

    h = jnp.zeros((batch, GW), f32)        # padded lanes stay exactly 0 (see gp packing)
    mx = jnp.full((batch, GW), -jnp.inf, f32)
    for t in range(T):
        xt = xproj[t * batch:(t + 1) * batch, :]                 # (B, 3*GW) contiguous rows
        hh = jnp.dot(h[:, 0:hid], whh, preferred_element_type=f32) + bh
        rz = jax.nn.sigmoid(xt[:, 0:2 * GW] + hh[:, 0:2 * GW])   # r and z in one EUP pass
        r = rz[:, 0:GW]
        z = rz[:, GW:2 * GW]
        n = jnp.tanh(xt[:, 2 * GW:3 * GW] + r * hh[:, 2 * GW:3 * GW])
        h = (1.0 - z) * n + z * h
        mx = jnp.maximum(mx, h)                                  # torch.max(out, dim=1)

    # single (B, NCLS) store
    o_ref[...] = jnp.dot(mx[:, 0:hid], wfc, preferred_element_type=f32) + bfc


# ---------------------------------------------------------------------------
# JAX glue: pure layout / parameter packing, single pallas_call
# ---------------------------------------------------------------------------
def crnn_forward(x, params, hidden=10):
    B, Hin, Win = x.shape
    d = _derive(B, Hin, Win)
    OH1, OW1, PH, PW, T = d["OH1"], d["OW1"], d["PH"], d["PW"], d["T"]
    assert OH1 % 2 == 0 and OW1 % 2 == 0 and PH == K2 and T >= 1, (
        "input spatial size must make conv2's output height 1 so squeeze(2) is valid")
    hid = hidden
    assert hid <= GW and NCLS <= GW
    f32 = jnp.float32

    # input (B, H, W) -> batch-interleaved (W*B, H): row = w*B + b, lane = h
    x_int = jnp.transpose(x.astype(f32), (2, 0, 1)).reshape(Win * B, Hin)

    # conv1 weights as K1 height-contraction matrices: w1m[v, h, c*OH1+oh] = w1[c,0,h-oh,v]
    w1 = params["conv1_w"].astype(f32)                         # (C1, 1, K1, K1)
    h_i = jnp.arange(Hin)[:, None]
    oh_i = jnp.arange(OH1)[None, :]
    u = h_i - oh_i
    valid = (u >= 0) & (u < K1)
    uc = jnp.clip(u, 0, K1 - 1)
    w1m = jnp.stack([
        jnp.concatenate([jnp.where(valid, w1[c, 0][uc, v], 0.0) for c in range(C1)],
                        axis=1)
        for v in range(K1)], axis=0).astype(f32)               # (K1, Hin, C1*OH1)

    # aux operand: pooling matrices, conv biases, flattened conv2 weights
    aux = jnp.zeros((d["rows"], d["cols"]), f32)
    mi = jnp.arange(PW * B)
    wi = jnp.arange(OW1 * B)
    pwv2 = jnp.where(((wi[None, :] // B) // 2 == mi[:, None] // B)
                     & (wi[None, :] % B == mi[:, None] % B), 0.5, 0.0).astype(f32)
    rc = jnp.arange(C1 * OH1)
    cc = jnp.arange(C1 * PH)
    mh = jnp.where((rc[:, None] // OH1 == cc[None, :] // PH)
                   & ((rc[:, None] % OH1) // 2 == cc[None, :] % PH), 0.5, 0.0).astype(f32)
    w2f = jnp.transpose(params["conv2_w"].astype(f32), (3, 1, 2, 0)).reshape(
        K2 * C1 * K2, C2)                                      # row = j*16 + c*8 + i
    aux = aux.at[d["r_pwv"]:d["r_pwv"] + PW * B, 0:OW1 * B].set(pwv2)
    aux = aux.at[d["r_mh"]:d["r_mh"] + C1 * OH1, 0:C1 * PH].set(mh)
    aux = aux.at[d["r_b1"], 0:C1 * OH1].set(jnp.repeat(params["conv1_b"].astype(f32), OH1))
    aux = aux.at[d["r_b2"], 0:C2].set(params["conv2_b"].astype(f32))
    aux = aux.at[d["r_w2"]:d["r_w2"] + K2 * C1 * K2, 0:C2].set(w2f)

    # GRU / FC pack: gates padded so r|z|n sit at lane offsets 0 / GW / 2*GW, pad lanes 0
    w_ih, w_hh = params["gru_w_ih"].astype(f32), params["gru_w_hh"].astype(f32)
    b_ih, b_hh = params["gru_b_ih"].astype(f32), params["gru_b_hh"].astype(f32)
    gp = jnp.zeros((C2 + 3 + 2 * hid, 3 * GW), f32)
    for g in range(3):
        gp = gp.at[0:C2, g * GW:g * GW + hid].set(w_ih[g * hid:(g + 1) * hid, :].T)
        gp = gp.at[C2 + 1:C2 + 1 + hid, g * GW:g * GW + hid].set(
            w_hh[g * hid:(g + 1) * hid, :].T)
    gp = gp.at[C2, 0:hid].set(b_ih[0:hid] + b_hh[0:hid])
    gp = gp.at[C2, GW:GW + hid].set(b_ih[hid:2 * hid] + b_hh[hid:2 * hid])
    gp = gp.at[C2, 2 * GW:2 * GW + hid].set(b_ih[2 * hid:3 * hid])
    gp = gp.at[C2 + 1 + hid, 2 * GW:2 * GW + hid].set(b_hh[2 * hid:3 * hid])
    gp = gp.at[C2 + 2 + hid:C2 + 2 + 2 * hid, 0:NCLS].set(params["fc_w"].astype(f32).T)
    gp = gp.at[C2 + 2 + 2 * hid, 0:NCLS].set(params["fc_b"].astype(f32))

    kernel = functools.partial(_crnn_kernel, hid=hid, batch=B)
    return pl.pallas_call(
        kernel,
        out_shape=jax.ShapeDtypeStruct((B, NCLS), f32),
        in_specs=[_vmem(), _vmem(), _vmem(), _vmem()],
        out_specs=_vmem(),
    )(x_int, w1m, aux, gp)


# ---------------------------------------------------------------------------
# Parameters and an independent pure-JAX reference (for a correctness check)
# ---------------------------------------------------------------------------
def init_params(key, hidden=10):
    ks = jax.random.split(key, 10)
    s = 0.1
    return dict(
        conv1_w=jax.random.normal(ks[0], (C1, 1, K1, K1), jnp.float32) * s,
        conv1_b=jax.random.normal(ks[1], (C1,), jnp.float32) * s,
        conv2_w=jax.random.normal(ks[2], (C2, C1, K2, K2), jnp.float32) * s,
        conv2_b=jax.random.normal(ks[3], (C2,), jnp.float32) * s,
        gru_w_ih=jax.random.normal(ks[4], (3 * hidden, C2), jnp.float32) * s,
        gru_w_hh=jax.random.normal(ks[5], (3 * hidden, hidden), jnp.float32) * s,
        gru_b_ih=jax.random.normal(ks[6], (3 * hidden,), jnp.float32) * s,
        gru_b_hh=jax.random.normal(ks[7], (3 * hidden,), jnp.float32) * s,
        fc_w=jax.random.normal(ks[8], (NCLS, hidden), jnp.float32) * s,
        fc_b=jax.random.normal(ks[9], (NCLS,), jnp.float32) * s,
    )


def crnn_reference(x, params, hidden=10):
    dn = ("NCHW", "OIHW", "NCHW")
    hp = jax.lax.Precision.HIGHEST
    y = jax.lax.conv_general_dilated(x[:, None, :, :].astype(jnp.float32),
                                     params["conv1_w"], (1, 1), "VALID",
                                     dimension_numbers=dn, precision=hp)
    y = jax.nn.relu(y + params["conv1_b"][None, :, None, None])
    B, C, H, W = y.shape
    y = y.reshape(B, C, H // 2, 2, W // 2, 2).mean(axis=(3, 5))       # AvgPool2d(2,2)
    y = jax.lax.conv_general_dilated(y, params["conv2_w"], (1, 1), "VALID",
                                     dimension_numbers=dn, precision=hp)
    y = jax.nn.relu(y + params["conv2_b"][None, :, None, None])
    seq = jnp.transpose(y[:, :, 0, :], (0, 2, 1))                     # (B, T, 3)

    hid = hidden
    w_ih, w_hh = params["gru_w_ih"], params["gru_w_hh"]
    b_ih, b_hh = params["gru_b_ih"], params["gru_b_hh"]

    def step(h, x_t):
        gi = x_t @ w_ih.T + b_ih
        gh = h @ w_hh.T + b_hh
        r = jax.nn.sigmoid(gi[:, :hid] + gh[:, :hid])
        z = jax.nn.sigmoid(gi[:, hid:2 * hid] + gh[:, hid:2 * hid])
        n = jnp.tanh(gi[:, 2 * hid:] + r * gh[:, 2 * hid:])
        h = (1.0 - z) * n + z * h
        return h, h

    h0 = jnp.zeros((x.shape[0], hid), jnp.float32)
    _, hs = jax.lax.scan(step, h0, jnp.transpose(seq, (1, 0, 2)))
    m = jnp.max(hs, axis=0)                                           # max over time
    return m @ params["fc_w"].T + params["fc_b"]


if __name__ == "__main__":
    key = jax.random.PRNGKey(0)
    k_x, k_p = jax.random.split(key)

    # (B, H, W) = (2, 20, 34): conv1(k5)->(16,30), pool->(8,15), conv2(k8)->(1,8)
    # so squeeze(2) is valid and the GRU sequence length is 8.
    B, Hin, Win = 2, 20, 34
    hidden = 10

    x = jax.random.normal(k_x, (B, Hin, Win), jnp.float32)
    params = init_params(k_p, hidden=hidden)

    fwd = jax.jit(functools.partial(crnn_forward, hidden=hidden))
    out = jax.block_until_ready(fwd(x, params))
    assert out.shape == (B, NCLS), out.shape

    ref = crnn_reference(x, params, hidden=hidden)
    assert jnp.allclose(out, ref, atol=1e-2, rtol=1e-2), (
        "max abs diff vs reference: %f" % float(jnp.max(jnp.abs(out - ref))))

    print("KERNEL_OK")
</pallas_src>

<mosaic_0001>
module attributes {stable_mosaic.version = 11 : i64} {
  func.func @_crnn_kernel(%arg0: memref<68x20xf32, #tpu.memory_space<vmem>>, %arg1: memref<5x20x32xf32, #tpu.memory_space<vmem>>, %arg2: memref<200x60xf32, #tpu.memory_space<vmem>>, %arg3: memref<26x384xf32, #tpu.memory_space<vmem>>, %arg4: memref<2x6xf32, #tpu.memory_space<vmem>>) attributes {dimension_semantics = [], scalar_prefetch = 0 : i64, scratch_operands = 0 : i64, tpu.core_type = #tpu.core_type<tc>} {
    %c0 = arith.constant 0 : index
    %c0_0 = arith.constant 0 : index
    %0 = vector.load %arg0[%c0, %c0_0] : memref<68x20xf32, #tpu.memory_space<vmem>>, vector<68x20xf32>
    %c0_1 = arith.constant 0 : index
    %c0_2 = arith.constant 0 : index
    %c0_3 = arith.constant 0 : index
    %1 = vector.load %arg1[%c0_1, %c0_2, %c0_3] : memref<5x20x32xf32, #tpu.memory_space<vmem>>, vector<5x20x32xf32>
    %2 = vector.extract_strided_slice %0 {offsets = [0, 0], sizes = [60, 20], strides = [1, 1]} : vector<68x20xf32> to vector<60x20xf32>
    %3 = vector.extract_strided_slice %1 {offsets = [0, 0, 0], sizes = [1, 20, 32], strides = [1, 1, 1]} : vector<5x20x32xf32> to vector<1x20x32xf32>
    %4 = vector.shape_cast %3 : vector<1x20x32xf32> to vector<20x32xf32>
    %cst = arith.constant dense<0.000000e+00> : vector<60x32xf32>
    %5 = tpu.matmul %2, %4, %cst {dimension_numbers = #tpu.dot_dimension_numbers<[1], [0], [0], [1], [0, 0, 1, 1], [], []>} : vector<60x20xf32>, vector<20x32xf32>, vector<60x32xf32> -> vector<60x32xf32>
    %6 = vector.extract_strided_slice %0 {offsets = [2, 0], sizes = [60, 20], strides = [1, 1]} : vector<68x20xf32> to vector<60x20xf32>
    %7 = vector.extract_strided_slice %1 {offsets = [1, 0, 0], sizes = [1, 20, 32], strides = [1, 1, 1]} : vector<5x20x32xf32> to vector<1x20x32xf32>
    %8 = vector.shape_cast %7 : vector<1x20x32xf32> to vector<20x32xf32>
    %cst_4 = arith.constant dense<0.000000e+00> : vector<60x32xf32>
    %9 = tpu.matmul %6, %8, %cst_4 {dimension_numbers = #tpu.dot_dimension_numbers<[1], [0], [0], [1], [0, 0, 1, 1], [], []>} : vector<60x20xf32>, vector<20x32xf32>, vector<60x32xf32> -> vector<60x32xf32>
    %10 = arith.addf %5, %9 : vector<60x32xf32>
    %11 = vector.extract_strided_slice %0 {offsets = [4, 0], sizes = [60, 20], strides = [1, 1]} : vector<68x20xf32> to vector<60x20xf32>
    %12 = vector.extract_strided_slice %1 {offsets = [2, 0, 0], sizes = [1, 20, 32], strides = [1, 1, 1]} : vector<5x20x32xf32> to vector<1x20x32xf32>
    %13 = vector.shape_cast %12 : vector<1x20x32xf32> to vector<20x32xf32>
    %cst_5 = arith.constant dense<0.000000e+00> : vector<60x32xf32>
    %14 = tpu.matmul %11, %13, %cst_5 {dimension_numbers = #tpu.dot_dimension_numbers<[1], [0], [0], [1], [0, 0, 1, 1], [], []>} : vector<60x20xf32>, vector<20x32xf32>, vector<60x32xf32> -> vector<60x32xf32>
    %15 = arith.addf %10, %14 : vector<60x32xf32>
    %16 = vector.extract_strided_slice %0 {offsets = [6, 0], sizes = [60, 20], strides = [1, 1]} : vector<68x20xf32> to vector<60x20xf32>
    %17 = vector.extract_strided_slice %1 {offsets = [3, 0, 0], sizes = [1, 20, 32], strides = [1, 1, 1]} : vector<5x20x32xf32> to vector<1x20x32xf32>
    %18 = vector.shape_cast %17 : vector<1x20x32xf32> to vector<20x32xf32>
    %cst_6 = arith.constant dense<0.000000e+00> : vector<60x32xf32>
    %19 = tpu.matmul %16, %18, %cst_6 {dimension_numbers = #tpu.dot_dimension_numbers<[1], [0], [0], [1], [0, 0, 1, 1], [], []>} : vector<60x20xf32>, vector<20x32xf32>, vector<60x32xf32> -> vector<60x32xf32>
    %20 = arith.addf %15, %19 : vector<60x32xf32>
    %21 = vector.extract_strided_slice %0 {offsets = [8, 0], sizes = [60, 20], strides = [1, 1]} : vector<68x20xf32> to vector<60x20xf32>
    %22 = vector.extract_strided_slice %1 {offsets = [4, 0, 0], sizes = [1, 20, 32], strides = [1, 1, 1]} : vector<5x20x32xf32> to vector<1x20x32xf32>
    %23 = vector.shape_cast %22 : vector<1x20x32xf32> to vector<20x32xf32>
    %cst_7 = arith.constant dense<0.000000e+00> : vector<60x32xf32>
    %24 = tpu.matmul %21, %23, %cst_7 {dimension_numbers = #tpu.dot_dimension_numbers<[1], [0], [0], [1], [0, 0, 1, 1], [], []>} : vector<60x20xf32>, vector<20x32xf32>, vector<60x32xf32> -> vector<60x32xf32>
    %25 = arith.addf %20, %24 : vector<60x32xf32>
    %c64 = arith.constant 64 : index
    %c0_8 = arith.constant 0 : index
    %26 = vector.load %arg2[%c64, %c0_8] : memref<200x60xf32, #tpu.memory_space<vmem>>, vector<1x32xf32>
    %27 = vector.broadcast %26 : vector<1x32xf32> to vector<60x32xf32>
    %28 = arith.addf %25, %27 : vector<60x32xf32>
    %cst_9 = arith.constant 0.000000e+00 : f32
    %29 = vector.broadcast %cst_9 : f32 to vector<60x32xf32>
    %30 = arith.maximumf %28, %29 : vector<60x32xf32>
    %c0_10 = arith.constant 0 : index
    %c0_11 = arith.constant 0 : index
    %31 = vector.load %arg2[%c0_10, %c0_11] : memref<200x60xf32, #tpu.memory_space<vmem>>, vector<30x60xf32>
    %c32 = arith.constant 32 : index
    %c0_12 = arith.constant 0 : index
    %32 = vector.load %arg2[%c32, %c0_12] : memref<200x60xf32, #tpu.memory_space<vmem>>, vector<32x16xf32>
    %cst_13 = arith.constant dense<0.000000e+00> : vector<30x32xf32>
    %33 = tpu.matmul %31, %30, %cst_13 {dimension_numbers = #tpu.dot_dimension_numbers<[1], [0], [0], [1], [0, 0, 1, 1], [], []>} : vector<30x60xf32>, vector<60x32xf32>, vector<30x32xf32> -> vector<30x32xf32>
    %cst_14 = arith.constant dense<0.000000e+00> : vector<30x16xf32>
    %34 = tpu.matmul %33, %32, %cst_14 {dimension_numbers = #tpu.dot_dimension_numbers<[1], [0], [0], [1], [0, 0, 1, 1], [], []>} : vector<30x32xf32>, vector<32x16xf32>, vector<30x16xf32> -> vector<30x16xf32>
    %35 = vector.extract_strided_slice %34 {offsets = [0, 0], sizes = [16, 16], strides = [1, 1]} : vector<30x16xf32> to vector<16x16xf32>
    %36 = vector.extract_strided_slice %34 {offsets = [2, 0], sizes = [16, 16], strides = [1, 1]} : vector<30x16xf32> to vector<16x16xf32>
    %37 = vector.extract_strided_slice %34 {offsets = [4, 0], sizes = [16, 16], strides = [1, 1]} : vector<30x16xf32> to vector<16x16xf32>
    %38 = vector.extract_strided_slice %34 {offsets = [6, 0], sizes = [16, 16], strides = [1, 1]} : vector<30x16xf32> to vector<16x16xf32>
    %39 = vector.extract_strided_slice %34 {offsets = [8, 0], sizes = [16, 16], strides = [1, 1]} : vector<30x16xf32> to vector<16x16xf32>
    %40 = vector.extract_strided_slice %34 {offsets = [10, 0], sizes = [16, 16], strides = [1, 1]} : vector<30x16xf32> to vector<16x16xf32>
    %41 = vector.extract_strided_slice %34 {offsets = [12, 0], sizes = [16, 16], strides = [1, 1]} : vector<30x16xf32> to vector<16x16xf32>
    %42 = vector.extract_strided_slice %34 {offsets = [14, 0], sizes = [16, 16], strides = [1, 1]} : vector<30x16xf32> to vector<16x16xf32>
    %43 = tpu.concatenate %35, %36, %37, %38, %39, %40, %41, %42 in 1 : vector<16x16xf32>, vector<16x16xf32>, vector<16x16xf32>, vector<16x16xf32>, vector<16x16xf32>, vector<16x16xf32>, vector<16x16xf32>, vector<16x16xf32> -> vector<16x128xf32>
    %c72 = arith.constant 72 : index
    %c0_15 = arith.constant 0 : index
    %44 = vector.load %arg2[%c72, %c0_15] : memref<200x60xf32, #tpu.memory_space<vmem>>, vector<128x3xf32>
    %c65 = arith.constant 65 : index
    %c0_16 = arith.constant 0 : index
    %45 = vector.load %arg2[%c65, %c0_16] : memref<200x60xf32, #tpu.memory_space<vmem>>, vector<1x3xf32>
    %cst_17 = arith.constant dense<0.000000e+00> : vector<16x3xf32>
    %46 = tpu.matmul %43, %44, %cst_17 {dimension_numbers = #tpu.dot_dimension_numbers<[1], [0], [0], [1], [0, 0, 1, 1], [], []>} : vector<16x128xf32>, vector<128x3xf32>, vector<16x3xf32> -> vector<16x3xf32>
    %47 = vector.broadcast %45 : vector<1x3xf32> to vector<16x3xf32>
    %48 = arith.addf %46, %47 : vector<16x3xf32>
    %cst_18 = arith.constant 0.000000e+00 : f32
    %49 = vector.broadcast %cst_18 : f32 to vector<16x3xf32>
    %50 = arith.maximumf %48, %49 : vector<16x3xf32>
    %c0_19 = arith.constant 0 : index
    %c0_20 = arith.constant 0 : index
    %51 = vector.load %arg3[%c0_19, %c0_20] : memref<26x384xf32, #tpu.memory_space<vmem>>, vector<3x384xf32>
    %c3 = arith.constant 3 : index
    %c0_21 = arith.constant 0 : index
    %52 = vector.load %arg3[%c3, %c0_21] : memref<26x384xf32, #tpu.memory_space<vmem>>, vector<1x384xf32>
    %c4 = arith.constant 4 : index
    %c0_22 = arith.constant 0 : index
    %53 = vector.load %arg3[%c4, %c0_22] : memref<26x384xf32, #tpu.memory_space<vmem>>, vector<10x384xf32>
    %c14 = arith.constant 14 : index
    %c0_23 = arith.constant 0 : index
    %54 = vector.load %arg3[%c14, %c0_23] : memref<26x384xf32, #tpu.memory_space<vmem>>, vector<1x384xf32>
    %c15 = arith.constant 15 : index
    %c0_24 = arith.constant 0 : index
    %55 = vector.load %arg3[%c15, %c0_24] : memref<26x384xf32, #tpu.memory_space<vmem>>, vector<10x6xf32>
    %c25 = arith.constant 25 : index
    %c0_25 = arith.constant 0 : index
    %56 = vector.load %arg3[%c25, %c0_25] : memref<26x384xf32, #tpu.memory_space<vmem>>, vector<1x6xf32>
    %cst_26 = arith.constant dense<0.000000e+00> : vector<16x384xf32>
    %57 = tpu.matmul %50, %51, %cst_26 {dimension_numbers = #tpu.dot_dimension_numbers<[1], [0], [0], [1], [0, 0, 1, 1], [], []>} : vector<16x3xf32>, vector<3x384xf32>, vector<16x384xf32> -> vector<16x384xf32>
    %58 = vector.broadcast %52 : vector<1x384xf32> to vector<16x384xf32>
    %59 = arith.addf %57, %58 : vector<16x384xf32>
    %cst_27 = arith.constant 0.000000e+00 : f32
    %60 = vector.broadcast %cst_27 : f32 to vector<2x128xf32>
    %cst_28 = arith.constant 0xFF800000 : f32
    %61 = vector.broadcast %cst_28 : f32 to vector<2x128xf32>
    %62 = vector.extract_strided_slice %59 {offsets = [0, 0], sizes = [2, 384], strides = [1, 1]} : vector<16x384xf32> to vector<2x384xf32>
    %63 = vector.extract_strided_slice %60 {offsets = [0, 0], sizes = [2, 10], strides = [1, 1]} : vector<2x128xf32> to vector<2x10xf32>
    %cst_29 = arith.constant dense<0.000000e+00> : vector<2x384xf32>
    %64 = tpu.matmul %63, %53, %cst_29 {dimension_numbers = #tpu.dot_dimension_numbers<[1], [0], [0], [1], [0, 0, 1, 1], [], []>} : vector<2x10xf32>, vector<10x384xf32>, vector<2x384xf32> -> vector<2x384xf32>
    %65 = vector.broadcast %54 : vector<1x384xf32> to vector<2x384xf32>
    %66 = arith.addf %64, %65 : vector<2x384xf32>
    %67 = vector.extract_strided_slice %62 {offsets = [0, 0], sizes = [2, 256], strides = [1, 1]} : vector<2x384xf32> to vector<2x256xf32>
    %68 = vector.extract_strided_slice %66 {offsets = [0, 0], sizes = [2, 256], strides = [1, 1]} : vector<2x384xf32> to vector<2x256xf32>
    %69 = arith.addf %67, %68 : vector<2x256xf32>
    %70 = arith.negf %69 : vector<2x256xf32>
    %71 = math.exp %70 : vector<2x256xf32>
    %cst_30 = arith.constant 1.000000e+00 : f32
    %72 = vector.broadcast %cst_30 : f32 to vector<2x256xf32>
    %73 = arith.addf %72, %71 : vector<2x256xf32>
    %74 = arith.divf %72, %73 : vector<2x256xf32>
    %75 = vector.extract_strided_slice %74 {offsets = [0, 0], sizes = [2, 128], strides = [1, 1]} : vector<2x256xf32> to vector<2x128xf32>
    %76 = vector.extract_strided_slice %74 {offsets = [0, 128], sizes = [2, 128], strides = [1, 1]} : vector<2x256xf32> to vector<2x128xf32>
    %77 = vector.extract_strided_slice %62 {offsets = [0, 256], sizes = [2, 128], strides = [1, 1]} : vector<2x384xf32> to vector<2x128xf32>
    %78 = vector.extract_strided_slice %66 {offsets = [0, 256], sizes = [2, 128], strides = [1, 1]} : vector<2x384xf32> to vector<2x128xf32>
    %79 = arith.mulf %75, %78 : vector<2x128xf32>
    %80 = arith.addf %77, %79 : vector<2x128xf32>
    %81 = math.tanh %80 : vector<2x128xf32>
    %cst_31 = arith.constant 1.000000e+00 : f32
    %82 = vector.broadcast %cst_31 : f32 to vector<2x128xf32>
    %83 = arith.subf %82, %76 : vector<2x128xf32>
    %84 = arith.mulf %83, %81 : vector<2x128xf32>
    %85 = arith.mulf %76, %60 : vector<2x128xf32>
    %86 = arith.addf %84, %85 : vector<2x128xf32>
    %87 = arith.maximumf %61, %86 : vector<2x128xf32>
    %88 = vector.extract_strided_slice %59 {offsets = [2, 0], sizes = [2, 384], strides = [1, 1]} : vector<16x384xf32> to vector<2x384xf32>
    %89 = vector.extract_strided_slice %86 {offsets = [0, 0], sizes = [2, 10], strides = [1, 1]} : vector<2x128xf32> to vector<2x10xf32>
    %cst_32 = arith.constant dense<0.000000e+00> : vector<2x384xf32>
    %90 = tpu.matmul %89, %53, %cst_32 {dimension_numbers = #tpu.dot_dimension_numbers<[1], [0], [0], [1], [0, 0, 1, 1], [], []>} : vector<2x10xf32>, vector<10x384xf32>, vector<2x384xf32> -> vector<2x384xf32>
    %91 = vector.broadcast %54 : vector<1x384xf32> to vector<2x384xf32>
    %92 = arith.addf %90, %91 : vector<2x384xf32>
    %93 = vector.extract_strided_slice %88 {offsets = [0, 0], sizes = [2, 256], strides = [1, 1]} : vector<2x384xf32> to vector<2x256xf32>
    %94 = vector.extract_strided_slice %92 {offsets = [0, 0], sizes = [2, 256], strides = [1, 1]} : vector<2x384xf32> to vector<2x256xf32>
    %95 = arith.addf %93, %94 : vector<2x256xf32>
    %96 = arith.negf %95 : vector<2x256xf32>
    %97 = math.exp %96 : vector<2x256xf32>
    %cst_33 = arith.constant 1.000000e+00 : f32
    %98 = vector.broadcast %cst_33 : f32 to vector<2x256xf32>
    %99 = arith.addf %98, %97 : vector<2x256xf32>
    %100 = arith.divf %98, %99 : vector<2x256xf32>
    %101 = vector.extract_strided_slice %100 {offsets = [0, 0], sizes = [2, 128], strides = [1, 1]} : vector<2x256xf32> to vector<2x128xf32>
    %102 = vector.extract_strided_slice %100 {offsets = [0, 128], sizes = [2, 128], strides = [1, 1]} : vector<2x256xf32> to vector<2x128xf32>
    %103 = vector.extract_strided_slice %88 {offsets = [0, 256], sizes = [2, 128], strides = [1, 1]} : vector<2x384xf32> to vector<2x128xf32>
    %104 = vector.extract_strided_slice %92 {offsets = [0, 256], sizes = [2, 128], strides = [1, 1]} : vector<2x384xf32> to vector<2x128xf32>
    %105 = arith.mulf %101, %104 : vector<2x128xf32>
    %106 = arith.addf %103, %105 : vector<2x128xf32>
    %107 = math.tanh %106 : vector<2x128xf32>
    %cst_34 = arith.constant 1.000000e+00 : f32
    %108 = vector.broadcast %cst_34 : f32 to vector<2x128xf32>
    %109 = arith.subf %108, %102 : vector<2x128xf32>
    %110 = arith.mulf %109, %107 : vector<2x128xf32>
    %111 = arith.mulf %102, %86 : vector<2x128xf32>
    %112 = arith.addf %110, %111 : vector<2x128xf32>
    %113 = arith.maximumf %87, %112 : vector<2x128xf32>
    %114 = vector.extract_strided_slice %59 {offsets = [4, 0], sizes = [2, 384], strides = [1, 1]} : vector<16x384xf32> to vector<2x384xf32>
    %115 = vector.extract_strided_slice %112 {offsets = [0, 0], sizes = [2, 10], strides = [1, 1]} : vector<2x128xf32> to vector<2x10xf32>
    %cst_35 = arith.constant dense<0.000000e+00> : vector<2x384xf32>
    %116 = tpu.matmul %115, %53, %cst_35 {dimension_numbers = #tpu.dot_dimension_numbers<[1], [0], [0], [1], [0, 0, 1, 1], [], []>} : vector<2x10xf32>, vector<10x384xf32>, vector<2x384xf32> -> vector<2x384xf32>
    %117 = vector.broadcast %54 : vector<1x384xf32> to vector<2x384xf32>
    %118 = arith.addf %116, %117 : vector<2x384xf32>
    %119 = vector.extract_strided_slice %114 {offsets = [0, 0], sizes = [2, 256], strides = [1, 1]} : vector<2x384xf32> to vector<2x256xf32>
    %120 = vector.extract_strided_slice %118 {offsets = [0, 0], sizes = [2, 256], strides = [1, 1]} : vector<2x384xf32> to vector<2x256xf32>
    %121 = arith.addf %119, %120 : vector<2x256xf32>
    %122 = arith.negf %121 : vector<2x256xf32>
    %123 = math.exp %122 : vector<2x256xf32>
    %cst_36 = arith.constant 1.000000e+00 : f32
    %124 = vector.broadcast %cst_36 : f32 to vector<2x256xf32>
    %125 = arith.addf %124, %123 : vector<2x256xf32>
    %126 = arith.divf %124, %125 : vector<2x256xf32>
    %127 = vector.extract_strided_slice %126 {offsets = [0, 0], sizes = [2, 128], strides = [1, 1]} : vector<2x256xf32> to vector<2x128xf32>
    %128 = vector.extract_strided_slice %126 {offsets = [0, 128], sizes = [2, 128], strides = [1, 1]} : vector<2x256xf32> to vector<2x128xf32>
    %129 = vector.extract_strided_slice %114 {offsets = [0, 256], sizes = [2, 128], strides = [1, 1]} : vector<2x384xf32> to vector<2x128xf32>
    %130 = vector.extract_strided_slice %118 {offsets = [0, 256], sizes = [2, 128], strides = [1, 1]} : vector<2x384xf32> to vector<2x128xf32>
    %131 = arith.mulf %127, %130 : vector<2x128xf32>
    %132 = arith.addf %129, %131 : vector<2x128xf32>
    %133 = math.tanh %132 : vector<2x128xf32>
    %cst_37 = arith.constant 1.000000e+00 : f32
    %134 = vector.broadcast %cst_37 : f32 to vector<2x128xf32>
    %135 = arith.subf %134, %128 : vector<2x128xf32>
    %136 = arith.mulf %135, %133 : vector<2x128xf32>
    %137 = arith.mulf %128, %112 : vector<2x128xf32>
    %138 = arith.addf %136, %137 : vector<2x128xf32>
    %139 = arith.maximumf %113, %138 : vector<2x128xf32>
    %140 = vector.extract_strided_slice %59 {offsets = [6, 0], sizes = [2, 384], strides = [1, 1]} : vector<16x384xf32> to vector<2x384xf32>
    %141 = vector.extract_strided_slice %138 {offsets = [0, 0], sizes = [2, 10], strides = [1, 1]} : vector<2x128xf32> to vector<2x10xf32>
    %cst_38 = arith.constant dense<0.000000e+00> : vector<2x384xf32>
    %142 = tpu.matmul %141, %53, %cst_38 {dimension_numbers = #tpu.dot_dimension_numbers<[1], [0], [0], [1], [0, 0, 1, 1], [], []>} : vector<2x10xf32>, vector<10x384xf32>, vector<2x384xf32> -> vector<2x384xf32>
    %143 = vector.broadcast %54 : vector<1x384xf32> to vector<2x384xf32>
    %144 = arith.addf %142, %143 : vector<2x384xf32>
    %145 = vector.extract_strided_slice %140 {offsets = [0, 0], sizes = [2, 256], strides = [1, 1]} : vector<2x384xf32> to vector<2x256xf32>
    %146 = vector.extract_strided_slice %144 {offsets = [0, 0], sizes = [2, 256], strides = [1, 1]} : vector<2x384xf32> to vector<2x256xf32>
    %147 = arith.addf %145, %146 : vector<2x256xf32>
    %148 = arith.negf %147 : vector<2x256xf32>
    %149 = math.exp %148 : vector<2x256xf32>
    %cst_39 = arith.constant 1.000000e+00 : f32
    %150 = vector.broadcast %cst_39 : f32 to vector<2x256xf32>
    %151 = arith.addf %150, %149 : vector<2x256xf32>
    %152 = arith.divf %150, %151 : vector<2x256xf32>
    %153 = vector.extract_strided_slice %152 {offsets = [0, 0], sizes = [2, 128], strides = [1, 1]} : vector<2x256xf32> to vector<2x128xf32>
    %154 = vector.extract_strided_slice %152 {offsets = [0, 128], sizes = [2, 128], strides = [1, 1]} : vector<2x256xf32> to vector<2x128xf32>
    %155 = vector.extract_strided_slice %140 {offsets = [0, 256], sizes = [2, 128], strides = [1, 1]} : vector<2x384xf32> to vector<2x128xf32>
    %156 = vector.extract_strided_slice %144 {offsets = [0, 256], sizes = [2, 128], strides = [1, 1]} : vector<2x384xf32> to vector<2x128xf32>
    %157 = arith.mulf %153, %156 : vector<2x128xf32>
    %158 = arith.addf %155, %157 : vector<2x128xf32>
    %159 = math.tanh %158 : vector<2x128xf32>
    %cst_40 = arith.constant 1.000000e+00 : f32
    %160 = vector.broadcast %cst_40 : f32 to vector<2x128xf32>
    %161 = arith.subf %160, %154 : vector<2x128xf32>
    %162 = arith.mulf %161, %159 : vector<2x128xf32>
    %163 = arith.mulf %154, %138 : vector<2x128xf32>
    %164 = arith.addf %162, %163 : vector<2x128xf32>
    %165 = arith.maximumf %139, %164 : vector<2x128xf32>
    %166 = vector.extract_strided_slice %59 {offsets = [8, 0], sizes = [2, 384], strides = [1, 1]} : vector<16x384xf32> to vector<2x384xf32>
    %167 = vector.extract_strided_slice %164 {offsets = [0, 0], sizes = [2, 10], strides = [1, 1]} : vector<2x128xf32> to vector<2x10xf32>
    %cst_41 = arith.constant dense<0.000000e+00> : vector<2x384xf32>
    %168 = tpu.matmul %167, %53, %cst_41 {dimension_numbers = #tpu.dot_dimension_numbers<[1], [0], [0], [1], [0, 0, 1, 1], [], []>} : vector<2x10xf32>, vector<10x384xf32>, vector<2x384xf32> -> vector<2x384xf32>
    %169 = vector.broadcast %54 : vector<1x384xf32> to vector<2x384xf32>
    %170 = arith.addf %168, %169 : vector<2x384xf32>
    %171 = vector.extract_strided_slice %166 {offsets = [0, 0], sizes = [2, 256], strides = [1, 1]} : vector<2x384xf32> to vector<2x256xf32>
    %172 = vector.extract_strided_slice %170 {offsets = [0, 0], sizes = [2, 256], strides = [1, 1]} : vector<2x384xf32> to vector<2x256xf32>
    %173 = arith.addf %171, %172 : vector<2x256xf32>
    %174 = arith.negf %173 : vector<2x256xf32>
    %175 = math.exp %174 : vector<2x256xf32>
    %cst_42 = arith.constant 1.000000e+00 : f32
    %176 = vector.broadcast %cst_42 : f32 to vector<2x256xf32>
    %177 = arith.addf %176, %175 : vector<2x256xf32>
    %178 = arith.divf %176, %177 : vector<2x256xf32>
    %179 = vector.extract_strided_slice %178 {offsets = [0, 0], sizes = [2, 128], strides = [1, 1]} : vector<2x256xf32> to vector<2x128xf32>
    %180 = vector.extract_strided_slice %178 {offsets = [0, 128], sizes = [2, 128], strides = [1, 1]} : vector<2x256xf32> to vector<2x128xf32>
    %181 = vector.extract_strided_slice %166 {offsets = [0, 256], sizes = [2, 128], strides = [1, 1]} : vector<2x384xf32> to vector<2x128xf32>
    %182 = vector.extract_strided_slice %170 {offsets = [0, 256], sizes = [2, 128], strides = [1, 1]} : vector<2x384xf32> to vector<2x128xf32>
    %183 = arith.mulf %179, %182 : vector<2x128xf32>
    %184 = arith.addf %181, %183 : vector<2x128xf32>
    %185 = math.tanh %184 : vector<2x128xf32>
    %cst_43 = arith.constant 1.000000e+00 : f32
    %186 = vector.broadcast %cst_43 : f32 to vector<2x128xf32>
    %187 = arith.subf %186, %180 : vector<2x128xf32>
    %188 = arith.mulf %187, %185 : vector<2x128xf32>
    %189 = arith.mulf %180, %164 : vector<2x128xf32>
    %190 = arith.addf %188, %189 : vector<2x128xf32>
    %191 = arith.maximumf %165, %190 : vector<2x128xf32>
    %192 = vector.extract_strided_slice %59 {offsets = [10, 0], sizes = [2, 384], strides = [1, 1]} : vector<16x384xf32> to vector<2x384xf32>
    %193 = vector.extract_strided_slice %190 {offsets = [0, 0], sizes = [2, 10], strides = [1, 1]} : vector<2x128xf32> to vector<2x10xf32>
    %cst_44 = arith.constant dense<0.000000e+00> : vector<2x384xf32>
    %194 = tpu.matmul %193, %53, %cst_44 {dimension_numbers = #tpu.dot_dimension_numbers<[1], [0], [0], [1], [0, 0, 1, 1], [], []>} : vector<2x10xf32>, vector<10x384xf32>, vector<2x384xf32> -> vector<2x384xf32>
    %195 = vector.broadcast %54 : vector<1x384xf32> to vector<2x384xf32>
    %196 = arith.addf %194, %195 : vector<2x384xf32>
    %197 = vector.extract_strided_slice %192 {offsets = [0, 0], sizes = [2, 256], strides = [1, 1]} : vector<2x384xf32> to vector<2x256xf32>
    %198 = vector.extract_strided_slice %196 {offsets = [0, 0], sizes = [2, 256], strides = [1, 1]} : vector<2x384xf32> to vector<2x256xf32>
    %199 = arith.addf %197, %198 : vector<2x256xf32>
    %200 = arith.negf %199 : vector<2x256xf32>
    %201 = math.exp %200 : vector<2x256xf32>
    %cst_45 = arith.constant 1.000000e+00 : f32
    %202 = vector.broadcast %cst_45 : f32 to vector<2x256xf32>
    %203 = arith.addf %202, %201 : vector<2x256xf32>
    %204 = arith.divf %202, %203 : vector<2x256xf32>
    %205 = vector.extract_strided_slice %204 {offsets = [0, 0], sizes = [2, 128], strides = [1, 1]} : vector<2x256xf32> to vector<2x128xf32>
    %206 = vector.extract_strided_slice %204 {offsets = [0, 128], sizes = [2, 128], strides = [1, 1]} : vector<2x256xf32> to vector<2x128xf32>
    %207 = vector.extract_strided_slice %192 {offsets = [0, 256], sizes = [2, 128], strides = [1, 1]} : vector<2x384xf32> to vector<2x128xf32>
    %208 = vector.extract_strided_slice %196 {offsets = [0, 256], sizes = [2, 128], strides = [1, 1]} : vector<2x384xf32> to vector<2x128xf32>
    %209 = arith.mulf %205, %208 : vector<2x128xf32>
    %210 = arith.addf %207, %209 : vector<2x128xf32>
    %211 = math.tanh %210 : vector<2x128xf32>
    %cst_46 = arith.constant 1.000000e+00 : f32
    %212 = vector.broadcast %cst_46 : f32 to vector<2x128xf32>
    %213 = arith.subf %212, %206 : vector<2x128xf32>
    %214 = arith.mulf %213, %211 : vector<2x128xf32>
    %215 = arith.mulf %206, %190 : vector<2x128xf32>
    %216 = arith.addf %214, %215 : vector<2x128xf32>
    %217 = arith.maximumf %191, %216 : vector<2x128xf32>
    %218 = vector.extract_strided_slice %59 {offsets = [12, 0], sizes = [2, 384], strides = [1, 1]} : vector<16x384xf32> to vector<2x384xf32>
    %219 = vector.extract_strided_slice %216 {offsets = [0, 0], sizes = [2, 10], strides = [1, 1]} : vector<2x128xf32> to vector<2x10xf32>
    %cst_47 = arith.constant dense<0.000000e+00> : vector<2x384xf32>
    %220 = tpu.matmul %219, %53, %cst_47 {dimension_numbers = #tpu.dot_dimension_numbers<[1], [0], [0], [1], [0, 0, 1, 1], [], []>} : vector<2x10xf32>, vector<10x384xf32>, vector<2x384xf32> -> vector<2x384xf32>
    %221 = vector.broadcast %54 : vector<1x384xf32> to vector<2x384xf32>
    %222 = arith.addf %220, %221 : vector<2x384xf32>
    %223 = vector.extract_strided_slice %218 {offsets = [0, 0], sizes = [2, 256], strides = [1, 1]} : vector<2x384xf32> to vector<2x256xf32>
    %224 = vector.extract_strided_slice %222 {offsets = [0, 0], sizes = [2, 256], strides = [1, 1]} : vector<2x384xf32> to vector<2x256xf32>
    %225 = arith.addf %223, %224 : vector<2x256xf32>
    %226 = arith.negf %225 : vector<2x256xf32>
    %227 = math.exp %226 : vector<2x256xf32>
    %cst_48 = arith.constant 1.000000e+00 : f32
    %228 = vector.broadcast %cst_48 : f32 to vector<2x256xf32>
    %229 = arith.addf %228, %227 : vector<2x256xf32>
    %230 = arith.divf %228, %229 : vector<2x256xf32>
    %231 = vector.extract_strided_slice %230 {offsets = [0, 0], sizes = [2, 128], strides = [1, 1]} : vector<2x256xf32> to vector<2x128xf32>
    %232 = vector.extract_strided_slice %230 {offsets = [0, 128], sizes = [2, 128], strides = [1, 1]} : vector<2x256xf32> to vector<2x128xf32>
    %233 = vector.extract_strided_slice %218 {offsets = [0, 256], sizes = [2, 128], strides = [1, 1]} : vector<2x384xf32> to vector<2x128xf32>
    %234 = vector.extract_strided_slice %222 {offsets = [0, 256], sizes = [2, 128], strides = [1, 1]} : vector<2x384xf32> to vector<2x128xf32>
    %235 = arith.mulf %231, %234 : vector<2x128xf32>
    %236 = arith.addf %233, %235 : vector<2x128xf32>
    %237 = math.tanh %236 : vector<2x128xf32>
    %cst_49 = arith.constant 1.000000e+00 : f32
    %238 = vector.broadcast %cst_49 : f32 to vector<2x128xf32>
    %239 = arith.subf %238, %232 : vector<2x128xf32>
    %240 = arith.mulf %239, %237 : vector<2x128xf32>
    %241 = arith.mulf %232, %216 : vector<2x128xf32>
    %242 = arith.addf %240, %241 : vector<2x128xf32>
    %243 = arith.maximumf %217, %242 : vector<2x128xf32>
    %244 = vector.extract_strided_slice %59 {offsets = [14, 0], sizes = [2, 384], strides = [1, 1]} : vector<16x384xf32> to vector<2x384xf32>
    %245 = vector.extract_strided_slice %242 {offsets = [0, 0], sizes = [2, 10], strides = [1, 1]} : vector<2x128xf32> to vector<2x10xf32>
    %cst_50 = arith.constant dense<0.000000e+00> : vector<2x384xf32>
    %246 = tpu.matmul %245, %53, %cst_50 {dimension_numbers = #tpu.dot_dimension_numbers<[1], [0], [0], [1], [0, 0, 1, 1], [], []>} : vector<2x10xf32>, vector<10x384xf32>, vector<2x384xf32> -> vector<2x384xf32>
    %247 = vector.broadcast %54 : vector<1x384xf32> to vector<2x384xf32>
    %248 = arith.addf %246, %247 : vector<2x384xf32>
    %249 = vector.extract_strided_slice %244 {offsets = [0, 0], sizes = [2, 256], strides = [1, 1]} : vector<2x384xf32> to vector<2x256xf32>
    %250 = vector.extract_strided_slice %248 {offsets = [0, 0], sizes = [2, 256], strides = [1, 1]} : vector<2x384xf32> to vector<2x256xf32>
    %251 = arith.addf %249, %250 : vector<2x256xf32>
    %252 = arith.negf %251 : vector<2x256xf32>
    %253 = math.exp %252 : vector<2x256xf32>
    %cst_51 = arith.constant 1.000000e+00 : f32
    %254 = vector.broadcast %cst_51 : f32 to vector<2x256xf32>
    %255 = arith.addf %254, %253 : vector<2x256xf32>
    %256 = arith.divf %254, %255 : vector<2x256xf32>
    %257 = vector.extract_strided_slice %256 {offsets = [0, 0], sizes = [2, 128], strides = [1, 1]} : vector<2x256xf32> to vector<2x128xf32>
    %258 = vector.extract_strided_slice %256 {offsets = [0, 128], sizes = [2, 128], strides = [1, 1]} : vector<2x256xf32> to vector<2x128xf32>
    %259 = vector.extract_strided_slice %244 {offsets = [0, 256], sizes = [2, 128], strides = [1, 1]} : vector<2x384xf32> to vector<2x128xf32>
    %260 = vector.extract_strided_slice %248 {offsets = [0, 256], sizes = [2, 128], strides = [1, 1]} : vector<2x384xf32> to vector<2x128xf32>
    %261 = arith.mulf %257, %260 : vector<2x128xf32>
    %262 = arith.addf %259, %261 : vector<2x128xf32>
    %263 = math.tanh %262 : vector<2x128xf32>
    %cst_52 = arith.constant 1.000000e+00 : f32
    %264 = vector.broadcast %cst_52 : f32 to vector<2x128xf32>
    %265 = arith.subf %264, %258 : vector<2x128xf32>
    %266 = arith.mulf %265, %263 : vector<2x128xf32>
    %267 = arith.mulf %258, %242 : vector<2x128xf32>
    %268 = arith.addf %266, %267 : vector<2x128xf32>
    %269 = arith.maximumf %243, %268 : vector<2x128xf32>
    %270 = vector.extract_strided_slice %269 {offsets = [0, 0], sizes = [2, 10], strides = [1, 1]} : vector<2x128xf32> to vector<2x10xf32>
    %cst_53 = arith.constant dense<0.000000e+00> : vector<2x6xf32>
    %271 = tpu.matmul %270, %55, %cst_53 {dimension_numbers = #tpu.dot_dimension_numbers<[1], [0], [0], [1], [0, 0, 1, 1], [], []>} : vector<2x10xf32>, vector<10x6xf32>, vector<2x6xf32> -> vector<2x6xf32>
    %272 = vector.broadcast %56 : vector<1x6xf32> to vector<2x6xf32>
    %273 = arith.addf %271, %272 : vector<2x6xf32>
    %c0_54 = arith.constant 0 : index
    %c0_55 = arith.constant 0 : index
    %274 = vector.load %arg4[%c0_54, %c0_55] : memref<2x6xf32, #tpu.memory_space<vmem>>, vector<2x6xf32>
    tpu.vector_store %arg4[%c0_54, %c0_55], %273 {strides = array<i32>} : memref<2x6xf32, #tpu.memory_space<vmem>>, vector<2x6xf32>,
    return
  }
}

</mosaic_0001>

<bundles_post_ra>
// kernel: crnn_forward.1
= control target key start
LH: loop header
LB: loop body
LE: loop exit
PB: predicated region body
PF: predicated region fallthrough
CT: control target
= control target key end

     0   :  { %vm83_vm0 = vcmask 1043456   ;;  %vm50_vm1 = vcmask 1045504   ;;  %vm66_vm2 = vcmask 162816   ;;  %vm272_vm3 = vcmask 1041408   ;;  %s2708_s0 = inlined_call_operand.vmem [shape: f32[68,20], index: 0, kind: input, shape index: {}]   ;;  %s2709_s1 = inlined_call_operand.vmem [shape: f32[5,20,32], index: 1, kind: input, shape index: {}]   ;;  %s2710_s2 = inlined_call_operand.vmem [shape: f32[200,60], index: 2, kind: input, shape index: {}]   ;;  %s2711_s3 = inlined_call_operand.vmem [shape: f32[26,384], index: 3, kind: input, shape index: {}]   ;;  %s2712_s4 = inlined_call_operand.hbm [shape: f32[2,6], index: 4, kind: output, shape index: {}]  }
   0x1   :  { %v32_v0 = vld [vmem:[%s2709_s1 + $0x28] sm:$0xf]  ;;  %v29_v1 = vld [vmem:[%s2709_s1 + $0x10] sm:$0xf]  ;;  %v31_v2 = vld [vmem:[%s2709_s1 + $0x20] sm:$0xff] }
   0x2   :  { %1816 = vmatpush.msk.msra.mxu0 %vm83_vm0, %v32_v0  ;;  %1825 = vmatpush.msk.msra.mxu1 %vm83_vm0, %v29_v1  ;;  %v35_v3 = vld [vmem:[%s2709_s1 + $0x40] sm:$0xf]  ;;  %v28_v4 = vld [vmem:[%s2709_s1 + $0x8] sm:$0xff]  ;;  %v34_v5 = vld [vmem:[%s2709_s1 + $0x38] sm:$0xff] }
   0x3   :  { %1834 = vmatpush.msk.msra.mxu2 %vm83_vm0, %v35_v3  ;;  %v38_v6 = vld [vmem:[%s2709_s1 + $0x58] sm:$0xf]  ;;  %v27_v8 = vld [vmem:[%s2709_s1] sm:$0xff]  ;;  %v33_v9 = vld [vmem:[%s2709_s1 + $0x30] sm:$0xff] }
   0x4   :  { %v30_v7 = vld [vmem:[%s2709_s1 + $0x18] sm:$0xff]  ;;  %101 = vmatpush.msra.mxu0 %v31_v2  ;;  %161 = vmatpush.msra.mxu1 %v28_v4  ;;  %v37_v10 = vld [vmem:[%s2709_s1 + $0x50] sm:$0xff]  ;;  %v18_v11 = vld [vmem:[%s2708_s0] sm:$0xff] }
   0x5   :  { %236 = vmatpush.msra.mxu2 %v34_v5  ;;  %1843 = vmatpush.msk.msra.mxu3 %vm83_vm0, %v38_v6  ;;  %v2158_v12 = vld [vmem:[%s2708_s0 + $0x8] sm:$0xff]  ;;  %v51_v13 = vrot.slane %v18_v11, 2  ;;  %v188_v14 = vrot.slane %v18_v11, 4  ;;  %v273_v15 = vrot.slane %v18_v11, 6  ;;  %v2169_v20 = vld [vmem:[%s2708_s0 + $0x10] sm:$0xff] }
   0x6   :  { %102 = vmatpush.msra.mxu0 %v30_v7  ;;  %162 = vmatpush.msra.mxu1 %v27_v8  ;;  %v52_v16 = vrot.slane %v2158_v12, 2  ;;  %v189_v17 = vrot.slane %v2158_v12, 4  ;;  %v274_v18 = vrot.slane %v2158_v12, 6  ;;  %v36_v19 = vld [vmem:[%s2709_s1 + $0x48] sm:$0xff] }
   0x7   :  { %237 = vmatpush.msra.mxu2 %v33_v9  ;;  %323 = vmatpush.msra.mxu3 %v37_v10 }
   0x8   :  { %v53_v21 = vsel %vm50_vm1, %v51_v13, %v52_v16  ;;  %1826 = vmatmul.msk.f32.vlgmr.msra.gmra.mxu1 %vm66_vm2, %v18_v11  ;;  %v190_v22 = vsel %vm83_vm0, %v188_v14, %v189_v17  ;;  %v275_v23 = vsel %vm272_vm3, %v273_v15, %v274_v18 }
   0x9   :  { %9 = vsyncpa [#allocation3], 0  ;;  %1817 = vmatmul.msk.f32.vlgmr.msra.gmra.mxu0 %vm66_vm2, %v53_v21  ;;  %1835 = vmatmul.msk.f32.vlgmr.msra.gmra.mxu2 %vm66_vm2, %v190_v22  ;;  %v54_v24 = vrot.slane %v2169_v20, 2  ;;  %v191_v25 = vrot.slane %v2169_v20, 4  ;;  %v276_v26 = vrot.slane %v2169_v20, 6  ;;  %v2186_v29 = vld [vmem:[%s2708_s0 + $0x18] sm:$0xff] }
   0xa   :  { %324 = vmatpush.msra.mxu3 %v36_v19  ;;  %v56_v31 = vrot.slane %v2186_v29, 2  ;;  %v193_v32 = vrot.slane %v2186_v29, 4  ;;  %v278_v33 = vrot.slane %v2186_v29, 6  ;;  %v2202_v36 = vld [vmem:[%s2708_s0 + $0x20] sm:$0xff]  ;;  %v41_v38 = vld [vmem:[%s2709_s1 + $0x70] sm:$0xf] }
   0xb   :  { %1844 = vmatmul.msk.f32.vlgmr.msra.gmra.mxu3 %vm66_vm2, %v275_v23  ;;  %v55_v27 = vsel %vm50_vm1, %v52_v16, %v54_v24  ;;  %v192_v28 = vsel %vm83_vm0, %v189_v17, %v191_v25  ;;  %v277_v30 = vsel %vm272_vm3, %v274_v18, %v276_v26  ;;  %v58_v39 = vrot.slane %v2202_v36, 2  ;;  %1852 = vmatpush.msk.msrb.mxu0 %vm83_vm0, %v41_v38  ;;  %v23_v44 = vld [vmem:[%s2708_s0 + $0x28] sm:$0xff]  ;;  %v39_v49 = vld [vmem:[%s2709_s1 + $0x60] sm:$0xff]  ;;  %v24_v53 = vld [vmem:[%s2708_s0 + $0x30] sm:$0xff]  ;;  %s2081_s8 = smov 80   ;;  %s2082_s10 = smov 48  }
   0xc   :  { %v57_v34 = vsel %vm50_vm1, %v54_v24, %v56_v31  ;;  %v194_v35 = vsel %vm83_vm0, %v191_v25, %v193_v32  ;;  %v279_v37 = vsel %vm272_vm3, %v276_v26, %v278_v33  ;;  %v195_v40 = vrot.slane %v2202_v36, 4  ;;  %v40_v48 = vld [vmem:[%s2709_s1 + $0x68] sm:$0xff]  ;;  %v25_v60 = vld [vmem:[%s2708_s0 + $0x38] sm:$0xff]  ;;  %v26_v4 = vld [vmem:[%s2708_s0 + $0x40] sm:$0xf]  ;;  %s2083_s11 = smov 16  }
   0xd   :  { %v280_v41 = vrot.slane %v2202_v36, 6  ;;  %v59_v42 = vsel %vm50_vm1, %v56_v31, %v58_v39  ;;  %v60_v46 = vrot.slane %v23_v44, 2  ;;  %v197_v47 = vrot.slane %v23_v44, 4  ;;  %377 = vmatpush.msrb.mxu0 %v40_v48  ;;  %s2084_s16 = smov 96   ;;  %s2085_s17 = smov 64  }
   0xe   :  { %v196_v43 = vsel %vm83_vm0, %v193_v32, %v195_v40  ;;  %v282_v50 = vrot.slane %v23_v44, 6  ;;  %v62_v55 = vrot.slane %v24_v53, 2  ;;  %v199_v56 = vrot.slane %v24_v53, 4  ;;  %s2086_s18 = smov 32   ;;  %s2087_s19 = smov 112  }
   0xf   :  { %v281_v45 = vsel %vm272_vm3, %v278_v33, %v280_v41  ;;  %v61_v51 = vsel %vm50_vm1, %v58_v39, %v60_v46  ;;  %v198_v52 = vsel %vm83_vm0, %v195_v40, %v197_v47  ;;  %378 = vmatpush.msrb.mxu0 %v39_v49  ;;  %v284_v57 = vrot.slane %v24_v53, 6  ;;  %s2089_s13 = smov [#allocation2]  }
  0x10   :  { %1827 = vmatmul.msk.f32.gmra.mxu1 %vm66_vm2, %v2158_v12  ;;  %v283_v54 = vsel %vm272_vm3, %v280_v41, %v282_v50  ;;  %v63_v58 = vsel %vm50_vm1, %v60_v46, %v62_v55  ;;  %v200_v59 = vsel %vm83_vm0, %v197_v47, %v199_v56  ;;  %v64_v62 = vrot.slane %v25_v60, 2  ;;  %s1805_s14 = sshll.u32 %s2089_s13, 4  ;;  %s1806_s14 = int_to_ptr.vmem [resolvable:$true] %s1805_s14 }
  0x11   :  { %1818 = vmatmul.msk.f32.gmra.mxu0 %vm66_vm2, %v55_v27  ;;  %1836 = vmatmul.msk.f32.gmra.mxu2 %vm66_vm2, %v192_v28  ;;  %v285_v61 = vsel %vm272_vm3, %v282_v50, %v284_v57  ;;  %v201_v63 = vrot.slane %v25_v60, 4  ;;  %v286_v0 = vrot.slane %v25_v60, 6  ;;  %v288_v5 = vrot.slane %v26_v4, 6 }
  0x12   :  { %v65_v1 = vsel %vm50_vm1, %v62_v55, %v64_v62  ;;  %vm438_vm4 = vcmask 490496   ;;  %vm483_vm5 = vcmask 261120   ;;  %vm592_vm6 = vcmask 130048  }
  0x13   :  { %1845 = vmatmul.msk.f32.gmra.mxu3 %vm66_vm2, %v277_v30  ;;  %v202_v2 = vsel %vm83_vm0, %v199_v56, %v201_v63  ;;  %v287_v3 = vsel %vm272_vm3, %v284_v57, %v286_v0  ;;  %v289_v6 = vsel %vm272_vm3, %v286_v0, %v288_v5  ;;  %vm597_vm7 = vcmask 392192  }
  0x14   :  { %vm600_vm8 = vcmask 523264   ;;  %vm603_vm9 = vcmask 654336   ;;  %vm606_vm10 = vcmask 785408   ;;  %vm609_vm11 = vcmask 916480  }
  0x15   :  { %vm686_vm12 = vcmask 1042432   ;;  %vm679_vm13 = vcmask 23552  }
  0x18   :  { %1828 = vmatmul.msk.f32.gmra.mxu1 %vm66_vm2, %v2169_v20 }
  0x19   :  { %1819 = vmatmul.msk.f32.gmra.mxu0 %vm66_vm2, %v57_v34  ;;  %1837 = vmatmul.msk.f32.gmra.mxu2 %vm66_vm2, %v194_v35 }
  0x1b   :  { %1846 = vmatmul.msk.f32.gmra.mxu3 %vm66_vm2, %v279_v37 }
  0x20   :  { %1829 = vmatmul.msk.f32.gmra.mxu1 %vm66_vm2, %v2186_v29 }
  0x21   :  { %1820 = vmatmul.msk.f32.gmra.mxu0 %vm66_vm2, %v59_v42  ;;  %1838 = vmatmul.msk.f32.gmra.mxu2 %vm66_vm2, %v196_v43 }
  0x23   :  { %1847 = vmatmul.msk.f32.gmra.mxu3 %vm66_vm2, %v281_v45 }
  0x28   :  { %1830 = vmatmul.msk.f32.gmra.mxu1 %vm66_vm2, %v2202_v36 }
  0x29   :  { %1821 = vmatmul.msk.f32.gmra.mxu0 %vm66_vm2, %v61_v51  ;;  %1839 = vmatmul.msk.f32.gmra.mxu2 %vm66_vm2, %v198_v52 }
  0x2b   :  { %1848 = vmatmul.msk.f32.gmra.mxu3 %vm66_vm2, %v283_v54 }
  0x30   :  { %1831 = vmatmul.msk.f32.gmra.mxu1 %vm66_vm2, %v23_v44 }
  0x31   :  { %1822 = vmatmul.msk.f32.gmra.mxu0 %vm66_vm2, %v63_v58  ;;  %1840 = vmatmul.msk.f32.gmra.mxu2 %vm66_vm2, %v200_v59 }
  0x33   :  { %1849 = vmatmul.msk.f32.gmra.mxu3 %vm66_vm2, %v285_v61 }
  0x38   :  { %1832 = vmatmul.msk.f32.gmra.mxu1 %vm66_vm2, %v24_v53 }
  0x39   :  { %1823 = vmatmul.msk.f32.gmra.mxu0 %vm66_vm2, %v65_v1  ;;  %1841 = vmatmul.msk.f32.gmra.mxu2 %vm66_vm2, %v202_v2 }
  0x3b   :  { %1850 = vmatmul.msk.f32.gmra.mxu3 %vm66_vm2, %v287_v3 }
  0x40   :  { %1833 = vmatmul.msk.f32.gmra.mxu1 %vm66_vm2, %v25_v60 }
  0x41   :  { %1824 = vmatmul.msk.f32.gmra.mxu0 %vm66_vm2, %v64_v62  ;;  %1842 = vmatmul.msk.f32.gmra.mxu2 %vm66_vm2, %v201_v63 }
  0x43   :  { %1851 = vmatmul.msk.f32.gmra.mxu3 %vm66_vm2, %v289_v6 }
  0x49   :  { %1853 = vmatmul.msk.f32.vlgmr.msrb.gmra.mxu0 %vm66_vm2, %v2158_v12 }
  0x51   :  { %1854 = vmatmul.msk.f32.gmra.mxu0 %vm66_vm2, %v2169_v20 }
  0x59   :  { %1855 = vmatmul.msk.f32.gmra.mxu0 %vm66_vm2, %v2186_v29 }
  0x61   :  { %1856 = vmatmul.msk.f32.gmra.mxu0 %vm66_vm2, %v2202_v36 }
  0x69   :  { %1857 = vmatmul.msk.f32.gmra.mxu0 %vm66_vm2, %v23_v44 }
  0x71   :  { %1858 = vmatmul.msk.f32.gmra.mxu0 %vm66_vm2, %v24_v53 }
  0x79   :  { %1859 = vmatmul.msk.f32.gmra.mxu0 %vm66_vm2, %v25_v60 }
  0x81   :  { %1860 = vmatmul.msk.f32.gmra.mxu0 %vm66_vm2, %v26_v4 }
  0x85   :  { %v164_v7 = vpop.f32.mrf.mxu1 }
  0x86   :  { %v104_v8 = vpop.f32.mrf.mxu0 }
  0x87   :  { %v165_v9 = vadd.f32 %v164_v7, %v104_v8  ;;  %v1973_v7 = vld [vmem:[%s2710_s2 + $0x40] ss:$0 sm:$0xff] }
  0x8c   :  { %v239_v10 = vpop.f32.mrf.mxu2 }
  0x8d   :  { %v263_v11 = vadd.f32 %v239_v10, %v165_v9  ;;  %v167_v20 = vpop.f32.mrf.mxu1 }
  0x8e   :  { %v107_v12 = vpop.f32.mrf.mxu0  ;;  %v326_v13 = vpop.f32.mrf.mxu3 }
  0x8f   :  { %v350_v14 = vadd.f32 %v326_v13, %v263_v11  ;;  %v168_v1 = vadd.f32 %v167_v20, %v107_v12 }
  0x94   :  { %v242_v21 = vpop.f32.mrf.mxu2 }
  0x95   :  { %v170_v24 = vpop.f32.mrf.mxu1  ;;  %v264_v8 = vadd.f32 %v242_v21, %v168_v1  ;;  %v622_v1 = vld [vmem:[%s2710_s2 + $0x98] sm:$0xff] }
  0x96   :  { %v110_v15 = vpop.f32.mrf.mxu0  ;;  %v329_v22 = vpop.f32.mrf.mxu3 }
  0x97   :  { %v171_v60 = vadd.f32 %v170_v24, %v110_v15 }
  0x9c   :  { %v245_v25 = vpop.f32.mrf.mxu2 }
  0x9d   :  { %v173_v29 = vpop.f32.mrf.mxu1  ;;  %v265_v3 = vadd.f32 %v245_v25, %v171_v60 }
  0x9e   :  { %v113_v16 = vpop.f32.mrf.mxu0  ;;  %v332_v28 = vpop.f32.mrf.mxu3 }
  0x9f   :  { %v174_v57 = vadd.f32 %v173_v29, %v113_v16 }
  0xa4   :  { %v248_v30 = vpop.f32.mrf.mxu2 }
  0xa5   :  { %v176_v33 = vpop.f32.mrf.mxu1  ;;  %v266_v61 = vadd.f32 %v248_v30, %v174_v57 }
  0xa6   :  { %v116_v17 = vpop.f32.mrf.mxu0  ;;  %v335_v32 = vpop.f32.mrf.mxu3 }
  0xa7   :  { %v177_v53 = vadd.f32 %v176_v33, %v116_v17  ;;  %v353_v9 = vadd.f32 %v335_v32, %v266_v61  ;;  %v435_v33 = vld [vmem:[%s2710_s2 + $0x28] sm:$0xff] }
  0xac   :  { %v251_v35 = vpop.f32.mrf.mxu2 }
  0xad   :  { %v179_v38 = vpop.f32.mrf.mxu1  ;;  %v267_v58 = vadd.f32 %v251_v35, %v177_v53 }
  0xae   :  { %v119_v18 = vpop.f32.mrf.mxu0  ;;  %v338_v36 = vpop.f32.mrf.mxu3 }
  0xaf   :  { %v180_v50 = vadd.f32 %v179_v38, %v119_v18  ;;  %v354_v4 = vadd.f32 %v338_v36, %v267_v58  ;;  %v351_v18 = vadd.f32 %v329_v22, %v264_v8  ;;  %v436_v22 = vld [vmem:[%s2710_s2 + $0x30] sm:$0xff]  ;;  %v430_v36 = vld [vmem:[%s2710_s2] sm:$0xff]  ;;  %v433_v38 = vld [vmem:[%s2710_s2 + $0x18] sm:$0x3f] }
  0xb4   :  { %v254_v39 = vpop.f32.mrf.mxu2 }
  0xb5   :  { %v182_v42 = vpop.f32.mrf.mxu1  ;;  %v268_v54 = vadd.f32 %v254_v39, %v180_v50  ;;  %v434_v39 = vld [vmem:[%s2710_s2 + $0x20] sm:$0xff] }
  0xb6   :  { %v122_v19 = vpop.f32.mrf.mxu0  ;;  %v341_v40 = vpop.f32.mrf.mxu3 }
  0xb7   :  { %v183_v47 = vadd.f32 %v182_v42, %v122_v19  ;;  %v355_v62 = vadd.f32 %v341_v40, %v268_v54 }
  0xbc   :  { %v257_v43 = vpop.f32.mrf.mxu2 }
  0xbd   :  { %v185_v46 = vpop.f32.mrf.mxu1  ;;  %v269_v51 = vadd.f32 %v257_v43, %v183_v47  ;;  %v626_v47 = vld [vmem:[%s2710_s2 + $0xb8] sm:$0xff] }
  0xbe   :  { %v125_v23 = vpop.f32.mrf.mxu0  ;;  %v344_v45 = vpop.f32.mrf.mxu3 }
  0xbf   :  { %v186_v52 = vadd.f32 %v185_v46, %v125_v23  ;;  %v356_v59 = vadd.f32 %v344_v45, %v269_v51  ;;  %v627_v46 = vld [vmem:[%s2710_s2 + $0xc0] sm:$0xff]  ;;  %v625_v51 = vld [vmem:[%s2710_s2 + $0xb0] sm:$0xff] }
  0xc0   :  { %630 = vmatpush.msrb.mxu3 %v627_v46 }
  0xc2   :  { %631 = vmatpush.msrb.mxu3 %v626_v47 }
  0xc4   :  { %v260_v48 = vpop.f32.mrf.mxu2  ;;  %632 = vmatpush.msrb.mxu3 %v625_v51 }
  0xc5   :  { %v270_v55 = vadd.f32 %v260_v48, %v186_v52 }
  0xc6   :  { %v380_v26 = vpop.f32.mrf.mxu0  ;;  %v347_v56 = vpop.f32.mrf.mxu3 }
  0xc7   :  { %v2282_v27 = vadd.f32 %v380_v26, %v350_v14  ;;  %v357_v63 = vadd.f32 %v347_v56, %v270_v55  ;;  %v352_v14 = vadd.f32 %v332_v28, %v265_v3  ;;  %v437_v28 = vld [vmem:[%s2710_s2 + $0x38] sm:$0xff]  ;;  %v624_v56 = vld [vmem:[%s2710_s2 + $0xa8] sm:$0xff]  ;;  %v621_v3 = vld [vmem:[%s2710_s2 + $0x90] sm:$0xff] }
  0xc8   :  { %508 = vmatpush.msrb.mxu2 %v437_v28  ;;  %633 = vmatpush.msrb.mxu3 %v624_v56 }
  0xca   :  { %509 = vmatpush.msrb.mxu2 %v436_v22 }
  0xcc   :  { %510 = vmatpush.msrb.mxu2 %v435_v33 }
  0xce   :  { %v383_v31 = vpop.f32.mrf.mxu0  ;;  %511 = vmatpush.msrb.mxu2 %v434_v39 }
  0xcf   :  { %v405_v23 = vadd.f32 %v383_v31, %v351_v18  ;;  %v414_v31 = vadd.f32 %v1973_v7, %v2282_v27  ;;  %v431_v27 = vld [vmem:[%s2710_s2 + $0x8] sm:$0xff]  ;;  %v619_v18 = vld [vmem:[%s2710_s2 + $0x80] sm:$0xff] }
  0xd1   :  { %v415_v30 = vadd.f32 %v1973_v7, %v405_v23  ;;  %v422_v35 = vmax.f32 %v414_v31, 0.0  ;;  %v615_v23 = vld [vmem:[%s2710_s2 + $0x60] sm:$0xff] }
  0xd6   :  { %v386_v34 = vpop.f32.mrf.mxu0 }
  0xd7   :  { %v406_v12 = vadd.f32 %v386_v34, %v352_v14  ;;  %v423_v34 = vmax.f32 %v415_v30, 0.0 }
  0xd9   :  { %v416_v26 = vadd.f32 %v1973_v7, %v406_v12  ;;  %v618_v12 = vld [vmem:[%s2710_s2 + $0x78] sm:$0xff] }
  0xdb   :  { %v424_v32 = vmax.f32 %v416_v26, 0.0 }
  0xde   :  { %v389_v37 = vpop.f32.mrf.mxu0 }
  0xdf   :  { %v407_v15 = vadd.f32 %v389_v37, %v353_v9  ;;  %v432_v37 = vld [vmem:[%s2710_s2 + $0x10] sm:$0xff] }
  0xe1   :  { %v417_v25 = vadd.f32 %v1973_v7, %v407_v15 }
  0xe3   :  { %v425_v29 = vmax.f32 %v417_v25, 0.0  ;;  %v613_v25 = vld [vmem:[%s2710_s2 + $0x50] sm:$0xff] }
  0xe6   :  { %v392_v41 = vpop.f32.mrf.mxu0 }
  0xe7   :  { %v408_v10 = vadd.f32 %v392_v41, %v354_v4 }
  0xe9   :  { %v418_v20 = vadd.f32 %v1973_v7, %v408_v10 }
  0xeb   :  { %v426_v21 = vmax.f32 %v418_v20, 0.0  ;;  %v616_v20 = vld [vmem:[%s2710_s2 + $0x68] sm:$0xff] }
  0xee   :  { %v395_v44 = vpop.f32.mrf.mxu0 }
  0xef   :  { %v409_v5 = vadd.f32 %v395_v44, %v355_v62 }
  0xf1   :  { %v419_v17 = vadd.f32 %v1973_v7, %v409_v5 }
  0xf3   :  { %v427_v24 = vmax.f32 %v419_v17, 0.0  ;;  %v620_v17 = vld [vmem:[%s2710_s2 + $0x88] sm:$0xff] }
  0xf6   :  { %v398_v49 = vpop.f32.mrf.mxu0 }
  0xf7   :  { %v410_v0 = vadd.f32 %v398_v49, %v356_v59 }
  0xf9   :  { %v420_v13 = vadd.f32 %v1973_v7, %v410_v0 }
  0xfb   :  { %v428_v19 = vmax.f32 %v420_v13, 0.0 }
  0xfe   :  { %v401_v2 = vpop.f32.mrf.mxu0 }
  0xff   :  { %v411_v6 = vadd.f32 %v401_v2, %v357_v63  ;;  %v623_v63 = vld [vmem:[%s2710_s2 + $0xa0] sm:$0xff] }
 0x100   :  { %634 = vmatpush.msrb.mxu3 %v623_v63 }
 0x101   :  { %v421_v11 = vadd.f32 %v1973_v7, %v411_v6 }
 0x102   :  { %635 = vmatpush.msrb.mxu3 %v622_v1  ;;  %v1974_v1 = vld [vmem:[%s2710_s2 + $0x41] ss:$0 sm:$0xff] }
 0x103   :  { %v429_v16 = vmax.f32 %v421_v11, 0.0 }
 0x104   :  { %636 = vmatpush.msrb.mxu3 %v621_v3  ;;  %v662_v3 = vld [vmem:[%s2711_s3 + $0x10] sm:$0xf0] }
 0x105   :  { %1861 = vmatpush.msk.msrb.mxu1 %vm83_vm0, %v429_v16 }
 0x106   :  { %637 = vmatpush.msrb.mxu3 %v620_v17 }
 0x107   :  { %463 = vmatpush.msrb.mxu1 %v428_v19  ;;  %v617_v19 = vld [vmem:[%s2710_s2 + $0x70] sm:$0xff] }
 0x108   :  { %638 = vmatpush.msrb.mxu3 %v619_v18 }
 0x109   :  { %464 = vmatpush.msrb.mxu1 %v427_v24  ;;  %v614_v24 = vld [vmem:[%s2710_s2 + $0x58] sm:$0xff] }
 0x10a   :  { %639 = vmatpush.msrb.mxu3 %v618_v12  ;;  %v2088_v12 = vmov 0.0  }
 0x10b   :  { %465 = vmatpush.msrb.mxu1 %v426_v21  ;;  %v612_v21 = vld [vmem:[%s2710_s2 + $0x48] sm:$0xff] }
 0x10c   :  { %640 = vmatpush.msrb.mxu3 %v617_v19 }
 0x10d   :  { %466 = vmatpush.msrb.mxu1 %v425_v29 }
 0x10e   :  { %641 = vmatpush.msrb.mxu3 %v616_v20  ;;  %v2489_v20 = vld [vmem:[%s2711_s3 + $0x3] ss:$8 sm:$0x7] }
 0x10f   :  { %467 = vmatpush.msrb.mxu1 %v424_v32 }
 0x110   :  { %642 = vmatpush.msrb.mxu3 %v615_v23 }
 0x111   :  { %468 = vmatpush.msrb.mxu1 %v423_v34 }
 0x112   :  { %643 = vmatpush.msrb.mxu3 %v614_v24  ;;  %v674_v24 = vperm.slane %v2489_v20, 1 }
 0x113   :  { %469 = vmatpush.msrb.mxu1 %v422_v35 }
 0x114   :  { %1862 = vmatmul.msk.f32.vlgmr.msrb.gmra.mxu1 %vm438_vm4, %v430_v36  ;;  %644 = vmatpush.msrb.mxu3 %v613_v25 }
 0x116   :  { %645 = vmatpush.msrb.mxu3 %v612_v21 }
 0x11c   :  { %1863 = vmatmul.msk.f32.gmra.mxu1 %vm438_vm4, %v431_v27 }
 0x124   :  { %1864 = vmatmul.msk.f32.gmra.mxu1 %vm438_vm4, %v432_v37 }
 0x12c   :  { %1865 = vmatmul.msk.f32.gmra.mxu1 %vm438_vm4, %v433_v38 }
 0x191   :  { %v471_v40 = vpop.f32.mrf.mxu1 }
 0x192   :  { %1866 = vmatmul.msk.f32.vlgmr.msrb.gmra.mxu2 %vm483_vm5, %v471_v40 }
 0x199   :  { %v474_v41 = vpop.f32.mrf.mxu1 }
 0x19a   :  { %1867 = vmatmul.msk.f32.gmra.mxu2 %vm483_vm5, %v474_v41 }
 0x1a1   :  { %v477_v42 = vpop.f32.mrf.mxu1 }
 0x1a2   :  { %1868 = vmatmul.msk.f32.gmra.mxu2 %vm483_vm5, %v477_v42 }
 0x1a9   :  { %v480_v43 = vpop.f32.mrf.mxu1 }
 0x1aa   :  { %1869 = vmatmul.msk.f32.gmra.mxu2 %vm483_vm5, %v480_v43 }
 0x215   :  { %v2317_v44 = vpop.f32.mrf.mxu2 }
 0x216   :  { %v528_v52 = vrot.slane %v2317_v44, 2  ;;  %v550_v53 = vrot.slane %v2317_v44, 6  ;;  %v539_v4 = vrot.slane %v2317_v44, 4 }
 0x21d   :  { %v2319_v45 = vpop.f32.mrf.mxu2 }
 0x21e   :  { %v551_v48 = vrot.slane %v2319_v45, 6  ;;  %v529_v49 = vrot.slane %v2319_v45, 2  ;;  %v540_v2 = vrot.slane %v2319_v45, 4 }
 0x220   :  { %v552_v57 = vsel %vm272_vm3, %v550_v53, %v551_v48  ;;  %v530_v59 = vsel %vm50_vm1, %v528_v52, %v529_v49  ;;  %v541_v6 = vsel %vm83_vm0, %v539_v4, %v540_v2  ;;  %v664_v4 = vld [vmem:[%s2711_s3 + $0x20] sm:$0x3f] }
 0x225   :  { %v519_v50 = vpop.f32.mrf.mxu2 }
 0x226   :  { %v531_v54 = vrot.slane %v519_v50, 2  ;;  %v553_v55 = vrot.slane %v519_v50, 6  ;;  %v542_v0 = vrot.slane %v519_v50, 4  ;;  %v1968_v7 = vpack.i.bf16 %v519_v50, %v2319_v45 }
 0x228   :  { %v554_v58 = vsel %vm272_vm3, %v551_v48, %v553_v55  ;;  %v532_v60 = vsel %vm50_vm1, %v529_v49, %v531_v54  ;;  %v543_v5 = vsel %vm83_vm0, %v540_v2, %v542_v0  ;;  %v665_v2 = vld [vmem:[%s2711_s3 + $0x28] sm:$0x3f] }
 0x229   :  { %v1963_v61 = vpack.i.bf16 %v554_v58, %v552_v57  ;;  %v1953_v62 = vpack.i.bf16 %v532_v60, %v530_v59  ;;  %570 = vrot.lane.b32.xlu2 %v532_v60, %s2081_s8  ;;  %v1958_v8 = vpack.i.bf16 %v543_v5, %v541_v6  ;;  %v655_v57 = vld [vmem:[%s2711_s3] sm:$0x7]  ;;  %v657_v59 = vld [vmem:[%s2711_s3 + $0x10] sm:$0x7]  ;;  %v663_v60 = vld [vmem:[%s2711_s3 + $0x18] sm:$0x3f] }
 0x22a   :  { %1872 = vmatpush.msk.msra.mxu3 %vm686_vm12, %v655_v57  ;;  %1878 = vmatpush.msk.msra.mxu2 %vm686_vm12, %v657_v59  ;;  %v2441_v6 = vrot.slane %v665_v2, 4 }
 0x22b   :  { %1964 = vrot.lane.b32.xlu1 %v1963_v61, %s2082_s10  ;;  %1954 = vrot.lane.b32.xlu0 %v1953_v62, %s2083_s11  ;;  %v660_v61 = vld [vmem:[%s2711_s3] sm:$0xf0]  ;;  %v2414_v62 = vrot.slane %v663_v60, 4 }
 0x22c   :  { %v778_v63 = vrot.slane %v660_v61, 4  ;;  %1898 = vmatpush.msk.msra.mxu0 %vm272_vm3, %v2441_v6 }
 0x22d   :  { %v522_v9 = vpop.f32.mrf.mxu2  ;;  %1886 = vmatpush.msk.msrb.mxu2 %vm272_vm3, %v2414_v62 }
 0x22e   :  { %v576_v10 = vrot.slane %v522_v9, 4  ;;  %v568_v11 = vrot.slane %v522_v9, 2  ;;  %v584_v15 = vrot.slane %v522_v9, 6 }
 0x230   :  { %v577_v13 = vsel %vm83_vm0, %v542_v0, %v576_v10  ;;  %v569_v14 = vsel %vm50_vm1, %v531_v54, %v568_v11  ;;  %v585_v16 = vsel %vm272_vm3, %v553_v55, %v584_v15  ;;  %v2420_v0 = vsel %vm83_vm0, %v778_v63, %v2414_v62 }
 0x231   :  { %578 = vrot.lane.b32.xlu2 %v543_v5, %s2084_s16  ;;  %925 = vmatpush.msrb.mxu2 %v2420_v0  ;;  %v661_v5 = vld [vmem:[%s2711_s3 + $0x8] sm:$0xf0]  ;;  %v2451_v11 = vrot.slane %v664_v4, 4 }
 0x233   :  { %1969 = vrot.lane.b32.xlu1 %v1968_v7, %s2085_s17  ;;  %1959 = vrot.lane.b32.xlu0 %v1958_v8, %s2086_s18  ;;  %v784_v7 = vrot.slane %v662_v3, 4  ;;  %s1807_s17 = sshll.u32 %s2712_s4, 4  ;;  %s1808_s17 = int_to_ptr.hbm [resolvable:$true] %s1807_s17 }
 0x235   :  { %v2447_v9 = vsel %vm83_vm0, %v784_v7, %v2441_v6 }
 0x236   :  { %1089 = vmatpush.msra.mxu0 %v2447_v9 }
 0x238   :  { %1910 = vmatpush.msk.msrb.mxu0 %vm272_vm3, %v2414_v62 }
 0x239   :  { %580 = vrot.lane.b32.xlu2 %v577_v13, %s2084_s16  ;;  %v781_v13 = vrot.slane %v661_v5, 4 }
 0x23a   :  { %1297 = vmatpush.msrb.mxu0 %v2420_v0 }
 0x23b   :  { %586 = vrot.lane.b32.xlu0 %v554_v58, %s2087_s19  ;;  %572 = vrot.lane.b32.xlu1 %v569_v14, %s2081_s8  ;;  %v656_v58 = vld [vmem:[%s2711_s3 + $0x8] sm:$0x7]  ;;  %v2461_v15 = vsel %vm83_vm0, %v781_v13, %v2451_v11 }
 0x23c   :  { %1875 = vmatpush.msk.msra.mxu1 %vm686_vm12, %v656_v58 }
 0x23e   :  { %1883 = vmatpush.msk.msrb.mxu1 %vm272_vm3, %v2441_v6 }
 0x240   :  { %855 = vmatpush.msrb.mxu1 %v2447_v9 }
 0x243   :  { %588 = vrot.lane.b32.xlu0 %v585_v16, %s2087_s19 }
 0x283   :  { %v571_v30 = vpop.permute.xlu2 %570 }
 0x28b   :  { %v579_v40 = vpop.permute.xlu2 %578 }
 0x293   :  { %v581_v53 = vpop.permute.xlu2 %580 }
 0x29d   :  { %v1965_v26 = vpop.permute.xlu1 %1964  ;;  %v1955_v29 = vpop.permute.xlu0 %1954 }
 0x29e   :  { %v1956_v28 = vunpack.i.l.bf16 %v1955_v29  ;;  %v1957_v31 = vunpack.i.h.bf16 %v1955_v29  ;;  %v1966_v34 = vunpack.i.l.bf16 %v1965_v26 }
 0x2a0   :  { %v593_v35 = vsel %vm592_vm6, %v2317_v44, %v1956_v28  ;;  %v594_v39 = vsel %vm592_vm6, %v2319_v45, %v1957_v31  ;;  %v1967_v44 = vunpack.i.h.bf16 %v1965_v26  ;;  %v673_v26 = vperm.slane %v2489_v20, 0  ;;  %v1871_v28 = vld [vmem:[%s2711_s3 + $0x1e] ss:$8 sm:$0x7] }
 0x2a5   :  { %v1970_v22 = vpop.permute.xlu1 %1969  ;;  %v1960_v32 = vpop.permute.xlu0 %1959 }
 0x2a6   :  { %v1961_v33 = vunpack.i.l.bf16 %v1960_v32  ;;  %v1962_v36 = vunpack.i.h.bf16 %v1960_v32  ;;  %v1971_v27 = vunpack.i.l.bf16 %v1970_v22  ;;  %v1972_v50 = vunpack.i.h.bf16 %v1970_v22 }
 0x2a7   :  { %v2500_v22 = vperm.slane %v1871_v28, 0 }
 0x2a8   :  { %v595_v37 = vsel %vm483_vm5, %v593_v35, %v1961_v33  ;;  %v596_v42 = vsel %vm483_vm5, %v594_v39, %v1962_v36  ;;  %v2506_v36 = vperm.slane %v1871_v28, 1 }
 0x2a9   :  { %v598_v38 = vsel %vm597_vm7, %v595_v37, %v1966_v34  ;;  %v599_v48 = vsel %vm597_vm7, %v596_v42, %v1967_v44  ;;  %vm790_vm7 = vcmask 80896  }
 0x2aa   :  { %v601_v41 = vsel %vm600_vm8, %v598_v38, %v1971_v27  ;;  %v602_v45 = vsel %vm600_vm8, %v599_v48, %v1972_v50  ;;  %v2512_v48 = vperm.slane %v1871_v28, 2 }
 0x2ab   :  { %v604_v43 = vsel %vm603_vm9, %v601_v41, %v571_v30 }
 0x2ac   :  { %v607_v46 = vsel %vm606_vm10, %v604_v43, %v579_v40 }
 0x2ad   :  { %v587_v47 = vpop.permute.xlu0 %586  ;;  %v573_v51 = vpop.permute.xlu1 %572 }
 0x2ae   :  { %v610_v49 = vsel %vm609_vm11, %v607_v46, %v587_v47  ;;  %v605_v52 = vsel %vm603_vm9, %v602_v45, %v573_v51 }
 0x2af   :  { %646 = vmatmul.f32.vlgmr.msrb.gmra.mxu3 %v610_v49  ;;  %v608_v54 = vsel %vm606_vm10, %v605_v52, %v581_v53  ;;  %v675_v53 = vperm.slane %v2489_v20, 2 }
 0x2b0   :  { %1881 = vmatpush.msk.msrb.mxu3 %vm272_vm3, %v2414_v62 }
 0x2b2   :  { %815 = vmatpush.msrb.mxu3 %v2420_v0 }
 0x2b5   :  { %v589_v55 = vpop.permute.xlu0 %588 }
 0x2b6   :  { %v611_v56 = vsel %vm609_vm11, %v608_v54, %v589_v55 }
 0x2b7   :  { %649 = vmatmul.f32.gmra.mxu3 %v611_v56 }
 0x332   :  { %v647_v8 = vpop.f32.mrf.mxu3 }
 0x333   :  { %v648_v10 = vadd.f32 %v1974_v1, %v647_v8 }
 0x335   :  { %v653_v14 = vmax.f32 %v648_v10, 0.0 }
 0x337   :  { %1873 = vmatmul.msk.f32.vlgmr.msra.gmra.mxu3 %vm679_vm13, %v653_v14  ;;  %1876 = vmatmul.msk.f32.vlgmr.msra.gmra.mxu1 %vm679_vm13, %v653_v14 }
 0x338   :  { %1879 = vmatmul.msk.f32.vlgmr.msra.gmra.mxu2 %vm679_vm13, %v653_v14  ;;  %1882 = vmatpush.msk.msra.mxu3 %vm272_vm3, %v2451_v11 }
 0x339   :  { %1890 = vmatpush.msk.msra.mxu1 %vm272_vm3, %v2441_v6  ;;  %1894 = vmatpush.msk.msra.mxu2 %vm272_vm3, %v2414_v62 }
 0x33a   :  { %v650_v16 = vpop.f32.mrf.mxu3  ;;  %835 = vmatpush.msra.mxu3 %v2461_v15 }
 0x33b   :  { %v651_v17 = vadd.f32 %v1974_v1, %v650_v16  ;;  %965 = vmatpush.msra.mxu1 %v2447_v9  ;;  %1049 = vmatpush.msra.mxu2 %v2420_v0 }
 0x33d   :  { %v654_v18 = vmax.f32 %v651_v17, 0.0 }
 0x33f   :  { %1874 = vmatmul.msk.f32.gmra.mxu3 %vm679_vm13, %v654_v18  ;;  %1877 = vmatmul.msk.f32.gmra.mxu1 %vm679_vm13, %v654_v18 }
 0x340   :  { %1880 = vmatmul.msk.f32.gmra.mxu2 %vm679_vm13, %v654_v18 }
 0x347   :  { %816 = vmatmul.f32.vlgmr.msrb.gmra.mxu3 %v2088_v12  ;;  %856 = vmatmul.f32.vlgmr.msrb.gmra.mxu1 %v2088_v12 }
 0x348   :  { %1888 = vmatpush.msk.msrb.mxu3 %vm272_vm3, %v2451_v11  ;;  %1902 = vmatpush.msk.msrb.mxu1 %vm272_vm3, %v2414_v62 }
 0x34a   :  { %945 = vmatpush.msrb.mxu3 %v2461_v15  ;;  %1173 = vmatpush.msrb.mxu1 %v2420_v0 }
 0x34f   :  { %836 = vmatmul.f32.vlgmr.msra.gmra.mxu3 %v2088_v12 }
 0x350   :  { %1896 = vmatpush.msk.msra.mxu3 %vm272_vm3, %v2451_v11 }
 0x352   :  { %1069 = vmatpush.msra.mxu3 %v2461_v15 }
 0x3b4   :  { %v736_v19 = vpop.f32.mrf.mxu1 }
 0x3b5   :  { %v2508_v37 = vadd.f32 %v736_v19, %v674_v24 }
 0x3ba   :  { %v713_v23 = vpop.f32.mrf.mxu3 }
 0x3bb   :  { %v2502_v31 = vadd.f32 %v713_v23, %v673_v26  ;;  %v759_v57 = vpop.f32.mrf.mxu2 }
 0x3bc   :  { %v739_v25 = vpop.f32.mrf.mxu1  ;;  %v2518_v63 = vadd.f32 %v759_v57, %v675_v53 }
 0x3bd   :  { %v2492_v21 = vadd.f32 %v739_v25, %v674_v24 }
 0x3c2   :  { %v716_v29 = vpop.f32.mrf.mxu3 }
 0x3c3   :  { %v2495_v30 = vadd.f32 %v716_v29, %v673_v26  ;;  %v2538_v23 = vpop.f32.mrf.mxu2 }
 0x3c4   :  { %v857_v50 = vpop.f32.mrf.mxu1 }
 0x3c5   :  { %v858_v54 = vadd.f32 %v857_v50, %v2512_v48 }
 0x3ca   :  { %v817_v32 = vpop.f32.mrf.mxu3 }
 0x3cb   :  { %v818_v33 = vadd.f32 %v817_v32, %v2500_v22 }
 0x3cd   :  { %v860_v34 = vadd.f32 %v818_v33, %v2502_v31 }
 0x3cf   :  { %v1884_v35 = vmul.f32 -1.442695, %v860_v34 }
 0x3d1   :  { %1975 = vpow2.f32 %v1884_v35 }
 0x3d2   :  { %v837_v27 = vpop.f32.mrf.mxu3 }
 0x3d3   :  { %v838_v38 = vadd.f32 %v837_v27, %v2506_v36 }
 0x3d5   :  { %v861_v39 = vadd.f32 %v838_v38, %v2508_v37 }
 0x3d7   :  { %v1976_v40 = vpop.eup %1975  ;;  %v1885_v41 = vmul.f32 -1.442695, %v861_v39 }
 0x3d8   :  { %v868_v42 = vadd.f32 1.0, %v1976_v40 }
 0x3d9   :  { %1977 = vpow2.f32 %v1885_v41 }
 0x3da   :  { %1979 = vrcp.f32 %v868_v42  ;;  %v881_v51 = vand.u32 2147483648, %v868_v42  ;;  %v879_v52 = vand.u32 2147483647, %v868_v42  ;;  %vm875_vm15 = vweird.f32 %v868_v42 }
 0x3dc   :  { %v882_v58 = vor.u32 1.1754944e-38, %v881_v51  ;;  %vm880_vm1 = vcmp.eq.f32.partialorder %v879_v52, 8.507059e+37 }
 0x3df   :  { %v1978_v43 = vpop.eup %1977 }
 0x3e0   :  { %v1980_v44 = vpop.eup %1979  ;;  %v869_v46 = vadd.f32 1.0, %v1978_v43 }
 0x3e1   :  { %v871_v47 = vmul.f32 %v1980_v44, %v868_v42  ;;  %vm876_vm14 = vweird.f32 %v1980_v44 }
 0x3e2   :  { %1981 = vrcp.f32 %v869_v46  ;;  %vm877_vm0 = vmor %vm875_vm15, %vm876_vm14  ;;  %v896_v3 = vand.u32 2147483648, %v869_v46  ;;  %v894_v5 = vand.u32 2147483647, %v869_v46  ;;  %vm890_vm4 = vweird.f32 %v869_v46 }
 0x3e3   :  { %v872_v49 = vsub.f32 1.0, %v871_v47 }
 0x3e4   :  { %v897_v10 = vor.u32 1.1754944e-38, %v896_v3  ;;  %vm895_vm6 = vcmp.eq.f32.partialorder %v894_v5, 8.507059e+37 }
 0x3e5   :  { %v873_v45 = vmul.f32 %v1980_v44, %v872_v49 }
 0x3e7   :  { %v874_v55 = vadd.f32 %v1980_v44, %v873_v45 }
 0x3e8   :  { %v1982_v56 = vpop.eup %1981 }
 0x3e9   :  { %v886_v59 = vmul.f32 %v1982_v56, %v869_v46  ;;  %v878_v60 = vsel %vm877_vm0, %v1980_v44, %v874_v55  ;;  %vm891_vm2 = vweird.f32 %v1982_v56 }
 0x3ea   :  { %v883_v61 = vsel %vm880_vm1, %v882_v58, %v878_v60  ;;  %vm892_vm5 = vmor %vm890_vm4, %vm891_vm2 }
 0x3eb   :  { %v887_v1 = vsub.f32 1.0, %v886_v59  ;;  %v900_v2 = vmul.f32 %v883_v61, %v858_v54 }
 0x3ed   :  { %v888_v4 = vmul.f32 %v1982_v56, %v887_v1  ;;  %v901_v7 = vadd.f32 %v900_v2, %v2518_v63 }
 0x3ef   :  { %v889_v8 = vadd.f32 %v1982_v56, %v888_v4  ;;  %1983 = vtanh.f32 %v901_v7 }
 0x3f1   :  { %v893_v13 = vsel %vm892_vm5, %v1982_v56, %v889_v8 }
 0x3f2   :  { %v898_v14 = vsel %vm895_vm6, %v897_v10, %v893_v13 }
 0x3f3   :  { %v903_v16 = vsub.f32 1.0, %v898_v14  ;;  %v905_v12 = vmul.f32 0.0, %v898_v14 }
 0x3f5   :  { %v1984_v17 = vpop.eup %1983 }
 0x3f6   :  { %v904_v18 = vmul.f32 %v1984_v17, %v903_v16 }
 0x3f8   :  { %v2521_v19 = vadd.f32 %v905_v12, %v904_v18 }
 0x3fa   :  { %1887 = vmatmul.msk.f32.vlgmr.msrb.gmra.mxu2 %vm790_vm7, %v2521_v19  ;;  %1889 = vmatmul.msk.f32.vlgmr.msrb.gmra.mxu3 %vm790_vm7, %v2521_v19  ;;  %v1024_v13 = vrot.slane %v2521_v19, 6 }
 0x3fb   :  { %1891 = vmatmul.msk.f32.vlgmr.msra.gmra.mxu1 %vm790_vm7, %v2521_v19  ;;  %1904 = vmatpush.msk.msrb.mxu2 %vm272_vm3, %v2451_v11 }
 0x3fc   :  { %1906 = vmatpush.msk.msrb.mxu3 %vm272_vm3, %v2441_v6  ;;  %1912 = vmatpush.msk.msra.mxu1 %vm272_vm3, %v2451_v11 }
 0x3fd   :  { %1193 = vmatpush.msrb.mxu2 %v2461_v15 }
 0x3fe   :  { %1213 = vmatpush.msrb.mxu3 %v2447_v9  ;;  %1317 = vmatpush.msra.mxu1 %v2461_v15 }
 0x478   :  { %v967_v46 = vpop.f32.mrf.mxu1 }
 0x479   :  { %v968_v45 = vadd.f32 %v967_v46, %v2512_v48 }
 0x47b   :  { %v1017_v58 = vrot.slane %v968_v45, 6 }
 0x47d   :  { %v927_v24 = vpop.f32.mrf.mxu2  ;;  %v947_v25 = vpop.f32.mrf.mxu3 }
 0x47e   :  { %v928_v26 = vadd.f32 %v927_v24, %v2500_v22  ;;  %v948_v29 = vadd.f32 %v947_v25, %v2506_v36 }
 0x480   :  { %v972_v28 = vrot.slane %v928_v26, 6  ;;  %v973_v32 = vrot.slane %v948_v29, 6 }
 0x482   :  { %v976_v33 = vadd.f32 %v972_v28, %v2502_v31  ;;  %v977_v34 = vadd.f32 %v973_v32, %v2508_v37 }
 0x484   :  { %v1892_v35 = vmul.f32 -1.442695, %v976_v33  ;;  %v1893_v27 = vmul.f32 -1.442695, %v977_v34 }
 0x486   :  { %1985 = vpow2.f32 %v1892_v35 }
 0x487   :  { %1987 = vpow2.f32 %v1893_v27 }
 0x48c   :  { %v1986_v38 = vpop.eup %1985 }
 0x48d   :  { %v1988_v39 = vpop.eup %1987  ;;  %v984_v40 = vadd.f32 1.0, %v1986_v38 }
 0x48e   :  { %v985_v41 = vadd.f32 1.0, %v1988_v39 }
 0x48f   :  { %1989 = vrcp.f32 %v984_v40  ;;  %v997_v50 = vand.u32 2147483648, %v984_v40  ;;  %v995_v54 = vand.u32 2147483647, %v984_v40  ;;  %vm991_vm9 = vweird.f32 %v984_v40 }
 0x490   :  { %1991 = vrcp.f32 %v985_v41  ;;  %v1012_v2 = vand.u32 2147483648, %v985_v41  ;;  %vm1006_vm13 = vweird.f32 %v985_v41  ;;  %v1010_v3 = vand.u32 2147483647, %v985_v41 }
 0x491   :  { %v998_v57 = vor.u32 1.1754944e-38, %v997_v50  ;;  %vm996_vm11 = vcmp.eq.f32.partialorder %v995_v54, 8.507059e+37 }
 0x492   :  { %v1013_v7 = vor.u32 1.1754944e-38, %v1012_v2  ;;  %vm1011_vm15 = vcmp.eq.f32.partialorder %v1010_v3, 8.507059e+37 }
 0x495   :  { %v1990_v42 = vpop.eup %1989 }
 0x496   :  { %v1992_v43 = vpop.eup %1991  ;;  %v987_v44 = vmul.f32 %v1990_v42, %v984_v40  ;;  %vm992_vm8 = vweird.f32 %v1990_v42 }
 0x497   :  { %v1002_v47 = vmul.f32 %v1992_v43, %v985_v41  ;;  %vm993_vm10 = vmor %vm991_vm9, %vm992_vm8  ;;  %vm1007_vm12 = vweird.f32 %v1992_v43 }
 0x498   :  { %v988_v49 = vsub.f32 1.0, %v987_v44  ;;  %vm1008_vm14 = vmor %vm1006_vm13, %vm1007_vm12 }
 0x499   :  { %v1003_v51 = vsub.f32 1.0, %v1002_v47 }
 0x49a   :  { %v989_v52 = vmul.f32 %v1990_v42, %v988_v49 }
 0x49b   :  { %v1004_v55 = vmul.f32 %v1992_v43, %v1003_v51 }
 0x49c   :  { %v990_v56 = vadd.f32 %v1990_v42, %v989_v52 }
 0x49d   :  { %v1005_v61 = vadd.f32 %v1992_v43, %v1004_v55 }
 0x49e   :  { %v994_v59 = vsel %vm993_vm10, %v1990_v42, %v990_v56 }
 0x49f   :  { %v999_v60 = vsel %vm996_vm11, %v998_v57, %v994_v59  ;;  %v1009_v5 = vsel %vm1008_vm14, %v1992_v43, %v1005_v61 }
 0x4a0   :  { %v1019_v1 = vmul.f32 %v1017_v58, %v999_v60  ;;  %v1014_v8 = vsel %vm1011_vm15, %v1013_v7, %v1009_v5 }
 0x4a1   :  { %v1022_v10 = vsub.f32 1.0, %v1014_v8  ;;  %v1026_v17 = vmul.f32 %v1024_v13, %v1014_v8 }
 0x4a2   :  { %v1020_v4 = vadd.f32 %v1019_v1, %v2518_v63 }
 0x4a4   :  { %1993 = vtanh.f32 %v1020_v4 }
 0x4aa   :  { %v1994_v14 = vpop.eup %1993 }
 0x4ab   :  { %v1023_v16 = vmul.f32 %v1994_v14, %v1022_v10 }
 0x4ad   :  { %v2547_v18 = vadd.f32 %v1026_v17, %v1023_v16 }
 0x4af   :  { %v2550_v12 = vrot.slane %v2547_v18, 2  ;;  %v1148_v10 = vrot.slane %v2547_v18, 6 }
 0x4b1   :  { %1895 = vmatmul.msk.f32.vlgmr.msra.gmra.mxu2 %vm790_vm7, %v2550_v12  ;;  %1897 = vmatmul.msk.f32.vlgmr.msra.gmra.mxu3 %vm790_vm7, %v2550_v12 }
 0x4b2   :  { %1899 = vmatmul.msk.f32.vlgmr.msra.gmra.mxu0 %vm790_vm7, %v2550_v12  ;;  %1914 = vmatpush.msk.msra.mxu2 %vm272_vm3, %v2441_v6 }
 0x4b3   :  { %1918 = vmatpush.msk.msra.mxu3 %vm272_vm3, %v2414_v62  ;;  %1920 = vmatpush.msk.msra.mxu0 %vm272_vm3, %v2451_v11 }
 0x4b4   :  { %1337 = vmatpush.msra.mxu2 %v2447_v9 }
 0x4b5   :  { %1408 = vmatpush.msra.mxu3 %v2420_v0  ;;  %1428 = vmatpush.msra.mxu0 %v2461_v15 }
 0x52f   :  { %v1091_v46 = vpop.f32.mrf.mxu0 }
 0x530   :  { %v1092_v45 = vadd.f32 %v1091_v46, %v2512_v48 }
 0x532   :  { %v1141_v58 = vrot.slane %v1092_v45, 4 }
 0x534   :  { %v1051_v24 = vpop.f32.mrf.mxu2  ;;  %v1071_v25 = vpop.f32.mrf.mxu3 }
 0x535   :  { %v1052_v26 = vadd.f32 %v1051_v24, %v2500_v22  ;;  %v1072_v29 = vadd.f32 %v1071_v25, %v2506_v36  ;;  %v1031_v25 = vmax.f32 %v2521_v19, %v2550_v12 }
 0x537   :  { %v1096_v28 = vrot.slane %v1052_v26, 4  ;;  %v1097_v32 = vrot.slane %v1072_v29, 4 }
 0x539   :  { %v1100_v33 = vadd.f32 %v1096_v28, %v2502_v31  ;;  %v1101_v34 = vadd.f32 %v1097_v32, %v2508_v37 }
 0x53b   :  { %v1900_v35 = vmul.f32 -1.442695, %v1100_v33  ;;  %v1901_v27 = vmul.f32 -1.442695, %v1101_v34 }
 0x53d   :  { %1995 = vpow2.f32 %v1900_v35 }
 0x53e   :  { %1997 = vpow2.f32 %v1901_v27 }
 0x543   :  { %v1996_v38 = vpop.eup %1995 }
 0x544   :  { %v1998_v39 = vpop.eup %1997  ;;  %v1108_v40 = vadd.f32 1.0, %v1996_v38 }
 0x545   :  { %v1109_v41 = vadd.f32 1.0, %v1998_v39 }
 0x546   :  { %1999 = vrcp.f32 %v1108_v40  ;;  %v1121_v50 = vand.u32 2147483648, %v1108_v40  ;;  %v1119_v54 = vand.u32 2147483647, %v1108_v40  ;;  %vm1115_vm1 = vweird.f32 %v1108_v40 }
 0x547   :  { %2001 = vrcp.f32 %v1109_v41  ;;  %v1136_v2 = vand.u32 2147483648, %v1109_v41  ;;  %vm1130_vm6 = vweird.f32 %v1109_v41  ;;  %v1134_v3 = vand.u32 2147483647, %v1109_v41 }
 0x548   :  { %v1122_v57 = vor.u32 1.1754944e-38, %v1121_v50  ;;  %vm1120_vm4 = vcmp.eq.f32.partialorder %v1119_v54, 8.507059e+37 }
 0x549   :  { %v1137_v7 = vor.u32 1.1754944e-38, %v1136_v2  ;;  %vm1135_vm9 = vcmp.eq.f32.partialorder %v1134_v3, 8.507059e+37 }
 0x54c   :  { %v2000_v42 = vpop.eup %1999 }
 0x54d   :  { %v2002_v43 = vpop.eup %2001  ;;  %v1111_v44 = vmul.f32 %v2000_v42, %v1108_v40  ;;  %vm1116_vm0 = vweird.f32 %v2000_v42 }
 0x54e   :  { %v1126_v47 = vmul.f32 %v2002_v43, %v1109_v41  ;;  %vm1117_vm2 = vmor %vm1115_vm1, %vm1116_vm0  ;;  %vm1131_vm5 = vweird.f32 %v2002_v43 }
 0x54f   :  { %v1112_v49 = vsub.f32 1.0, %v1111_v44  ;;  %vm1132_vm8 = vmor %vm1130_vm6, %vm1131_vm5 }
 0x550   :  { %v1127_v51 = vsub.f32 1.0, %v1126_v47 }
 0x551   :  { %v1113_v52 = vmul.f32 %v2000_v42, %v1112_v49 }
 0x552   :  { %v1128_v55 = vmul.f32 %v2002_v43, %v1127_v51 }
 0x553   :  { %v1114_v56 = vadd.f32 %v2000_v42, %v1113_v52 }
 0x554   :  { %v1129_v61 = vadd.f32 %v2002_v43, %v1128_v55 }
 0x555   :  { %v1118_v59 = vsel %vm1117_vm2, %v2000_v42, %v1114_v56 }
 0x556   :  { %v1123_v60 = vsel %vm1120_vm4, %v1122_v57, %v1118_v59  ;;  %v1133_v5 = vsel %vm1132_vm8, %v2002_v43, %v1129_v61 }
 0x557   :  { %v1143_v1 = vmul.f32 %v1141_v58, %v1123_v60  ;;  %v1138_v8 = vsel %vm1135_vm9, %v1137_v7, %v1133_v5 }
 0x558   :  { %v1146_v13 = vsub.f32 1.0, %v1138_v8  ;;  %v1150_v17 = vmul.f32 %v1148_v10, %v1138_v8 }
 0x559   :  { %v1144_v4 = vadd.f32 %v1143_v1, %v2518_v63 }
 0x55b   :  { %2003 = vtanh.f32 %v1144_v4 }
 0x561   :  { %v2004_v14 = vpop.eup %2003 }
 0x562   :  { %v1147_v16 = vmul.f32 %v2004_v14, %v1146_v13 }
 0x564   :  { %v2574_v24 = vadd.f32 %v1150_v17, %v1147_v16 }
 0x566   :  { %v1153_v26 = vrot.slane %v2574_v24, 4  ;;  %v1272_v8 = vrot.slane %v2574_v24, 6 }
 0x568   :  { %v2579_v29 = vmax.f32 %v1031_v25, %v1153_v26  ;;  %1903 = vmatmul.msk.f32.vlgmr.msrb.gmra.mxu1 %vm790_vm7, %v1153_v26  ;;  %1905 = vmatmul.msk.f32.vlgmr.msrb.gmra.mxu2 %vm790_vm7, %v1153_v26 }
 0x569   :  { %1907 = vmatmul.msk.f32.vlgmr.msrb.gmra.mxu3 %vm790_vm7, %v1153_v26  ;;  %1922 = vmatpush.msk.msrb.mxu1 %vm272_vm3, %v2441_v6 }
 0x56a   :  { %1926 = vmatpush.msk.msrb.mxu2 %vm272_vm3, %v2414_v62  ;;  %1928 = vmatpush.msk.msrb.mxu3 %vm272_vm3, %v2451_v11 }
 0x56b   :  { %1448 = vmatpush.msrb.mxu1 %v2447_v9 }
 0x56c   :  { %1532 = vmatpush.msrb.mxu2 %v2420_v0  ;;  %1552 = vmatpush.msrb.mxu3 %v2461_v15 }
 0x5e5   :  { %v1175_v19 = vpop.f32.mrf.mxu1 }
 0x5e6   :  { %v1176_v18 = vadd.f32 %v1175_v19, %v2500_v22 }
 0x5e8   :  { %v1220_v12 = vrot.slane %v1176_v18, 2 }
 0x5ea   :  { %v1224_v28 = vadd.f32 %v1220_v12, %v2502_v31 }
 0x5eb   :  { %v1195_v32 = vpop.f32.mrf.mxu2 }
 0x5ec   :  { %v1908_v33 = vmul.f32 -1.442695, %v1224_v28  ;;  %v1196_v34 = vadd.f32 %v1195_v32, %v2506_v36  ;;  %v1215_v46 = vpop.f32.mrf.mxu3 }
 0x5ed   :  { %v1216_v49 = vadd.f32 %v1215_v46, %v2512_v48 }
 0x5ee   :  { %2005 = vpow2.f32 %v1908_v33  ;;  %v1221_v35 = vrot.slane %v1196_v34, 2 }
 0x5ef   :  { %v1265_v57 = vrot.slane %v1216_v49, 2 }
 0x5f0   :  { %v1225_v27 = vadd.f32 %v1221_v35, %v2508_v37 }
 0x5f2   :  { %v1909_v38 = vmul.f32 -1.442695, %v1225_v27 }
 0x5f4   :  { %v2006_v39 = vpop.eup %2005  ;;  %2007 = vpow2.f32 %v1909_v38 }
 0x5f5   :  { %v1232_v40 = vadd.f32 1.0, %v2006_v39 }
 0x5f7   :  { %2009 = vrcp.f32 %v1232_v40  ;;  %v1245_v47 = vand.u32 2147483648, %v1232_v40  ;;  %v1243_v51 = vand.u32 2147483647, %v1232_v40  ;;  %vm1239_vm11 = vweird.f32 %v1232_v40 }
 0x5f9   :  { %v1246_v54 = vor.u32 1.1754944e-38, %v1245_v47  ;;  %vm1244_vm13 = vcmp.eq.f32.partialorder %v1243_v51, 8.507059e+37 }
 0x5fa   :  { %v2008_v41 = vpop.eup %2007 }
 0x5fb   :  { %v1233_v42 = vadd.f32 1.0, %v2008_v41 }
 0x5fd   :  { %v2010_v43 = vpop.eup %2009  ;;  %2011 = vrcp.f32 %v1233_v42  ;;  %v1260_v60 = vand.u32 2147483648, %v1233_v42  ;;  %v1258_v1 = vand.u32 2147483647, %v1233_v42  ;;  %vm1254_vm15 = vweird.f32 %v1233_v42 }
 0x5fe   :  { %v1235_v44 = vmul.f32 %v2010_v43, %v1232_v40  ;;  %vm1240_vm10 = vweird.f32 %v2010_v43 }
 0x5ff   :  { %vm1241_vm12 = vmor %vm1239_vm11, %vm1240_vm10  ;;  %v1261_v4 = vor.u32 1.1754944e-38, %v1260_v60  ;;  %vm1259_vm1 = vcmp.eq.f32.partialorder %v1258_v1, 8.507059e+37 }
 0x600   :  { %v1236_v31 = vsub.f32 1.0, %v1235_v44 }
 0x602   :  { %v1237_v50 = vmul.f32 %v2010_v43, %v1236_v31 }
 0x603   :  { %v2012_v45 = vpop.eup %2011 }
 0x604   :  { %v1250_v37 = vmul.f32 %v2012_v45, %v1233_v42  ;;  %v1238_v52 = vadd.f32 %v2010_v43, %v1237_v50  ;;  %vm1255_vm14 = vweird.f32 %v2012_v45 }
 0x605   :  { %vm1256_vm0 = vmor %vm1254_vm15, %vm1255_vm14 }
 0x606   :  { %v1251_v55 = vsub.f32 1.0, %v1250_v37  ;;  %v1242_v56 = vsel %vm1241_vm12, %v2010_v43, %v1238_v52 }
 0x607   :  { %v1247_v58 = vsel %vm1244_vm13, %v1246_v54, %v1242_v56 }
 0x608   :  { %v1252_v59 = vmul.f32 %v2012_v45, %v1251_v55  ;;  %v1267_v61 = vmul.f32 %v1265_v57, %v1247_v58 }
 0x60a   :  { %v1253_v2 = vadd.f32 %v2012_v45, %v1252_v59  ;;  %v1268_v3 = vadd.f32 %v1267_v61, %v2518_v63 }
 0x60c   :  { %v1257_v5 = vsel %vm1256_vm0, %v2012_v45, %v1253_v2  ;;  %2013 = vtanh.f32 %v1268_v3  ;;  %v2625_v45 = vadd.f32 %v2538_v23, %v675_v53 }
 0x60d   :  { %v1262_v7 = vsel %vm1259_vm1, %v1261_v4, %v1257_v5 }
 0x60e   :  { %v1270_v10 = vsub.f32 1.0, %v1262_v7  ;;  %v1274_v16 = vmul.f32 %v1272_v8, %v1262_v7 }
 0x612   :  { %v2014_v13 = vpop.eup %2013 }
 0x613   :  { %v1271_v14 = vmul.f32 %v2014_v13, %v1270_v10 }
 0x615   :  { %v1275_v17 = vadd.f32 %v1274_v16, %v1271_v14 }
 0x617   :  { %v2600_v25 = vrot.slane %v1275_v17, 6 }
 0x619   :  { %1911 = vmatmul.msk.f32.vlgmr.msrb.gmra.mxu0 %vm790_vm7, %v2600_v25  ;;  %1913 = vmatmul.msk.f32.vlgmr.msra.gmra.mxu1 %vm790_vm7, %v2600_v25  ;;  %v1279_v53 = vmax.f32 %v2579_v29, %v2600_v25 }
 0x61a   :  { %1915 = vmatmul.msk.f32.vlgmr.msra.gmra.mxu2 %vm790_vm7, %v2600_v25  ;;  %1930 = vmatpush.msk.msrb.mxu0 %vm272_vm3, %v2441_v6 }
 0x61b   :  { %1934 = vmatpush.msk.msra.mxu1 %vm272_vm3, %v2414_v62  ;;  %1936 = vmatpush.msk.msra.mxu2 %vm272_vm3, %v2451_v11 }
 0x61c   :  { %1572 = vmatpush.msrb.mxu0 %v2447_v9 }
 0x61d   :  { %1656 = vmatpush.msra.mxu1 %v2420_v0  ;;  %1676 = vmatpush.msra.mxu2 %v2461_v15 }
 0x696   :  { %v1299_v63 = vpop.f32.mrf.mxu0  ;;  %v1319_v24 = vpop.f32.mrf.mxu1 }
 0x697   :  { %v1300_v26 = vadd.f32 %v1299_v63, %v2500_v22  ;;  %v1320_v19 = vadd.f32 %v1319_v24, %v2506_v36 }
 0x699   :  { %v1342_v18 = vadd.f32 %v1300_v26, %v2495_v30  ;;  %v1343_v12 = vadd.f32 %v1320_v19, %v2492_v21 }
 0x69b   :  { %v1916_v62 = vmul.f32 -1.442695, %v1342_v18  ;;  %v1917_v28 = vmul.f32 -1.442695, %v1343_v12 }
 0x69d   :  { %2015 = vpow2.f32 %v1916_v62  ;;  %v1339_v44 = vpop.f32.mrf.mxu2 }
 0x69e   :  { %2017 = vpow2.f32 %v1917_v28  ;;  %v1340_v47 = vadd.f32 %v1339_v44, %v2512_v48 }
 0x6a3   :  { %v2016_v11 = vpop.eup %2015 }
 0x6a4   :  { %v2018_v32 = vpop.eup %2017  ;;  %v1350_v33 = vadd.f32 1.0, %v2016_v11 }
 0x6a5   :  { %v1351_v0 = vadd.f32 1.0, %v2018_v32 }
 0x6a6   :  { %2019 = vrcp.f32 %v1350_v33  ;;  %v1363_v40 = vand.u32 2147483648, %v1350_v33  ;;  %v1361_v42 = vand.u32 2147483647, %v1350_v33  ;;  %vm1357_vm4 = vweird.f32 %v1350_v33 }
 0x6a7   :  { %2021 = vrcp.f32 %v1351_v0  ;;  %v1378_v37 = vand.u32 2147483648, %v1351_v0  ;;  %vm1372_vm9 = vweird.f32 %v1351_v0  ;;  %v1376_v54 = vand.u32 2147483647, %v1351_v0 }
 0x6a8   :  { %v1364_v31 = vor.u32 1.1754944e-38, %v1363_v40  ;;  %vm1362_vm6 = vcmp.eq.f32.partialorder %v1361_v42, 8.507059e+37 }
 0x6a9   :  { %v1379_v57 = vor.u32 1.1754944e-38, %v1378_v37  ;;  %vm1377_vm11 = vcmp.eq.f32.partialorder %v1376_v54, 8.507059e+37 }
 0x6ac   :  { %v2020_v15 = vpop.eup %2019 }
 0x6ad   :  { %v2022_v34 = vpop.eup %2021  ;;  %v1353_v35 = vmul.f32 %v2020_v15, %v1350_v33  ;;  %vm1358_vm2 = vweird.f32 %v2020_v15 }
 0x6ae   :  { %v1368_v27 = vmul.f32 %v2022_v34, %v1351_v0  ;;  %vm1359_vm5 = vmor %vm1357_vm4, %vm1358_vm2  ;;  %vm1373_vm8 = vweird.f32 %v2022_v34 }
 0x6af   :  { %v1354_v38 = vsub.f32 1.0, %v1353_v35  ;;  %vm1374_vm10 = vmor %vm1372_vm9, %vm1373_vm8 }
 0x6b0   :  { %v1369_v39 = vsub.f32 1.0, %v1368_v27 }
 0x6b1   :  { %v1355_v41 = vmul.f32 %v2020_v15, %v1354_v38 }
 0x6b2   :  { %v1370_v43 = vmul.f32 %v2022_v34, %v1369_v39 }
 0x6b3   :  { %v1356_v46 = vadd.f32 %v2020_v15, %v1355_v41 }
 0x6b4   :  { %v1371_v51 = vadd.f32 %v2022_v34, %v1370_v43 }
 0x6b5   :  { %v1360_v49 = vsel %vm1359_vm5, %v2020_v15, %v1356_v46 }
 0x6b6   :  { %v1365_v50 = vsel %vm1362_vm6, %v1364_v31, %v1360_v49  ;;  %v1375_v56 = vsel %vm1374_vm10, %v2022_v34, %v1371_v51 }
 0x6b7   :  { %v1382_v52 = vmul.f32 %v1365_v50, %v1340_v47  ;;  %v1380_v58 = vsel %vm1377_vm11, %v1379_v57, %v1375_v56 }
 0x6b8   :  { %v1385_v59 = vsub.f32 1.0, %v1380_v58  ;;  %v1387_v20 = vmul.f32 %v1380_v58, %v2600_v25 }
 0x6b9   :  { %v1383_v55 = vadd.f32 %v1382_v52, %v2625_v45 }
 0x6bb   :  { %2023 = vtanh.f32 %v1383_v55 }
 0x6c1   :  { %v2024_v60 = vpop.eup %2023 }
 0x6c2   :  { %v1386_v61 = vmul.f32 %v2024_v60, %v1385_v59 }
 0x6c4   :  { %v2629_v1 = vadd.f32 %v1387_v20, %v1386_v61 }
 0x6c6   :  { %1919 = vmatmul.msk.f32.vlgmr.msra.gmra.mxu3 %vm790_vm7, %v2629_v1  ;;  %1921 = vmatmul.msk.f32.vlgmr.msra.gmra.mxu0 %vm790_vm7, %v2629_v1  ;;  %v2638_v23 = vmax.f32 %v1279_v53, %v2629_v1  ;;  %v1507_v47 = vrot.slane %v2629_v1, 6 }
 0x6c7   :  { %1923 = vmatmul.msk.f32.vlgmr.msrb.gmra.mxu1 %vm790_vm7, %v2629_v1  ;;  %1938 = vmatpush.msk.msra.mxu3 %vm272_vm3, %v2441_v6 }
 0x6c9   :  { %1696 = vmatpush.msra.mxu3 %v2447_v9 }
 0x743   :  { %v1430_v2 = vpop.f32.mrf.mxu0 }
 0x744   :  { %v1431_v29 = vadd.f32 %v1430_v2, %v2506_v36  ;;  %v1450_v18 = vpop.f32.mrf.mxu1 }
 0x745   :  { %v1451_v28 = vadd.f32 %v1450_v18, %v2512_v48 }
 0x746   :  { %v1456_v3 = vrot.slane %v1431_v29, 6 }
 0x747   :  { %v1500_v34 = vrot.slane %v1451_v28, 6 }
 0x748   :  { %v1460_v4 = vadd.f32 %v1456_v3, %v2492_v21 }
 0x749   :  { %v1410_v5 = vpop.f32.mrf.mxu3 }
 0x74a   :  { %v1925_v7 = vmul.f32 -1.442695, %v1460_v4  ;;  %v1411_v8 = vadd.f32 %v1410_v5, %v2500_v22 }
 0x74c   :  { %2025 = vpow2.f32 %v1925_v7  ;;  %v1455_v10 = vrot.slane %v1411_v8, 6 }
 0x74e   :  { %v1459_v13 = vadd.f32 %v1455_v10, %v2495_v30 }
 0x750   :  { %v1924_v14 = vmul.f32 -1.442695, %v1459_v13 }
 0x752   :  { %v2026_v16 = vpop.eup %2025  ;;  %2027 = vpow2.f32 %v1924_v14 }
 0x753   :  { %v1468_v6 = vadd.f32 1.0, %v2026_v16 }
 0x755   :  { %2029 = vrcp.f32 %v1468_v6  ;;  %v1495_v39 = vand.u32 2147483648, %v1468_v6  ;;  %vm1489_vm1 = vweird.f32 %v1468_v6  ;;  %v1493_v41 = vand.u32 2147483647, %v1468_v6 }
 0x757   :  { %v1496_v44 = vor.u32 1.1754944e-38, %v1495_v39  ;;  %vm1494_vm4 = vcmp.eq.f32.partialorder %v1493_v41, 8.507059e+37 }
 0x758   :  { %v2028_v9 = vpop.eup %2027 }
 0x759   :  { %v1467_v17 = vadd.f32 1.0, %v2028_v9 }
 0x75b   :  { %2031 = vrcp.f32 %v1467_v17  ;;  %v2030_v25 = vpop.eup %2029  ;;  %v1480_v62 = vand.u32 2147483648, %v1467_v17  ;;  %v1478_v32 = vand.u32 2147483647, %v1467_v17  ;;  %vm1474_vm13 = vweird.f32 %v1467_v17 }
 0x75c   :  { %v1485_v63 = vmul.f32 %v2030_v25, %v1468_v6  ;;  %vm1490_vm0 = vweird.f32 %v2030_v25 }
 0x75d   :  { %v1481_v15 = vor.u32 1.1754944e-38, %v1480_v62  ;;  %vm1479_vm15 = vcmp.eq.f32.partialorder %v1478_v32, 8.507059e+37  ;;  %vm1491_vm2 = vmor %vm1489_vm1, %vm1490_vm0 }
 0x75e   :  { %v1486_v19 = vsub.f32 1.0, %v1485_v63 }
 0x760   :  { %v1487_v33 = vmul.f32 %v2030_v25, %v1486_v19 }
 0x761   :  { %v2032_v24 = vpop.eup %2031 }
 0x762   :  { %v1470_v26 = vmul.f32 %v2032_v24, %v1467_v17  ;;  %vm1475_vm12 = vweird.f32 %v2032_v24  ;;  %v1488_v27 = vadd.f32 %v2030_v25, %v1487_v33 }
 0x763   :  { %vm1476_vm14 = vmor %vm1474_vm13, %vm1475_vm12 }
 0x764   :  { %v1471_v12 = vsub.f32 1.0, %v1470_v26  ;;  %v1492_v43 = vsel %vm1491_vm2, %v2030_v25, %v1488_v27 }
 0x765   :  { %v1497_v46 = vsel %vm1494_vm4, %v1496_v44, %v1492_v43 }
 0x766   :  { %v1472_v11 = vmul.f32 %v2032_v24, %v1471_v12  ;;  %v1505_v31 = vsub.f32 1.0, %v1497_v46  ;;  %v1509_v51 = vmul.f32 %v1507_v47, %v1497_v46 }
 0x768   :  { %v1473_v0 = vadd.f32 %v2032_v24, %v1472_v11 }
 0x76a   :  { %v1477_v35 = vsel %vm1476_vm14, %v2032_v24, %v1473_v0  ;;  %vm1766_vm14 = vcmask 1040384  }
 0x76b   :  { %v1482_v38 = vsel %vm1479_vm15, %v1481_v15, %v1477_v35 }
 0x76c   :  { %v1502_v40 = vmul.f32 %v1500_v34, %v1482_v38 }
 0x76e   :  { %v1503_v42 = vadd.f32 %v1502_v40, %v2625_v45 }
 0x770   :  { %2033 = vtanh.f32 %v1503_v42 }
 0x776   :  { %v2034_v49 = vpop.eup %2033 }
 0x777   :  { %v1506_v50 = vmul.f32 %v2034_v49, %v1505_v31 }
 0x779   :  { %v2652_v37 = vadd.f32 %v1509_v51, %v1506_v50 }
 0x77b   :  { %v2655_v52 = vrot.slane %v2652_v37, 2  ;;  %v1631_v35 = vrot.slane %v2652_v37, 6 }
 0x77d   :  { %1927 = vmatmul.msk.f32.vlgmr.msrb.gmra.mxu2 %vm790_vm7, %v2655_v52  ;;  %1929 = vmatmul.msk.f32.vlgmr.msrb.gmra.mxu3 %vm790_vm7, %v2655_v52  ;;  %v1514_v54 = vmax.f32 %v2638_v23, %v2655_v52  ;;  %v669_v23 = vld [vmem:[%s2711_s3 + $0x30] sm:$0xff] }
 0x77e   :  { %1931 = vmatmul.msk.f32.vlgmr.msrb.gmra.mxu0 %vm790_vm7, %v2655_v52 }
 0x7fb   :  { %v1574_v10 = vpop.f32.mrf.mxu0 }
 0x7fc   :  { %v1575_v9 = vadd.f32 %v1574_v10, %v2512_v48 }
 0x7fe   :  { %v1624_v19 = vrot.slane %v1575_v9, 4 }
 0x800   :  { %v1534_v55 = vpop.f32.mrf.mxu2  ;;  %v1554_v56 = vpop.f32.mrf.mxu3 }
 0x801   :  { %v1535_v57 = vadd.f32 %v1534_v55, %v2500_v22  ;;  %v1555_v58 = vadd.f32 %v1554_v56, %v2506_v36 }
 0x803   :  { %v1579_v59 = vrot.slane %v1535_v57, 4  ;;  %v1580_v60 = vrot.slane %v1555_v58, 4 }
 0x805   :  { %v1583_v61 = vadd.f32 %v1579_v59, %v2495_v30  ;;  %v1584_v20 = vadd.f32 %v1580_v60, %v2492_v21 }
 0x807   :  { %v1932_v1 = vmul.f32 -1.442695, %v1583_v61  ;;  %v1933_v53 = vmul.f32 -1.442695, %v1584_v20 }
 0x809   :  { %2035 = vpow2.f32 %v1932_v1 }
 0x80a   :  { %2037 = vpow2.f32 %v1933_v53 }
 0x80f   :  { %v2036_v2 = vpop.eup %2035 }
 0x810   :  { %v2038_v29 = vpop.eup %2037  ;;  %v1591_v3 = vadd.f32 1.0, %v2036_v2 }
 0x811   :  { %v1592_v4 = vadd.f32 1.0, %v2038_v29 }
 0x812   :  { %2039 = vrcp.f32 %v1591_v3  ;;  %v1604_v16 = vand.u32 2147483648, %v1591_v3  ;;  %v1602_v25 = vand.u32 2147483647, %v1591_v3  ;;  %vm1598_vm6 = vweird.f32 %v1591_v3 }
 0x813   :  { %2041 = vrcp.f32 %v1592_v4  ;;  %v1619_v11 = vand.u32 2147483648, %v1592_v4  ;;  %vm1613_vm11 = vweird.f32 %v1592_v4  ;;  %v1617_v32 = vand.u32 2147483647, %v1592_v4 }
 0x814   :  { %v1605_v26 = vor.u32 1.1754944e-38, %v1604_v16  ;;  %vm1603_vm9 = vcmp.eq.f32.partialorder %v1602_v25, 8.507059e+37 }
 0x815   :  { %v1620_v15 = vor.u32 1.1754944e-38, %v1619_v11  ;;  %vm1618_vm13 = vcmp.eq.f32.partialorder %v1617_v32, 8.507059e+37 }
 0x818   :  { %v2040_v5 = vpop.eup %2039 }
 0x819   :  { %v2042_v7 = vpop.eup %2041  ;;  %v1594_v8 = vmul.f32 %v2040_v5, %v1591_v3  ;;  %vm1599_vm5 = vweird.f32 %v2040_v5 }
 0x81a   :  { %v1609_v13 = vmul.f32 %v2042_v7, %v1592_v4  ;;  %vm1600_vm8 = vmor %vm1598_vm6, %vm1599_vm5  ;;  %vm1614_vm10 = vweird.f32 %v2042_v7 }
 0x81b   :  { %v1595_v14 = vsub.f32 1.0, %v1594_v8  ;;  %vm1615_vm12 = vmor %vm1613_vm11, %vm1614_vm10 }
 0x81c   :  { %v1610_v6 = vsub.f32 1.0, %v1609_v13 }
 0x81d   :  { %v1596_v17 = vmul.f32 %v2040_v5, %v1595_v14 }
 0x81e   :  { %v1611_v63 = vmul.f32 %v2042_v7, %v1610_v6 }
 0x81f   :  { %v1597_v24 = vadd.f32 %v2040_v5, %v1596_v17 }
 0x820   :  { %v1612_v62 = vadd.f32 %v2042_v7, %v1611_v63 }
 0x821   :  { %v1601_v18 = vsel %vm1600_vm8, %v2040_v5, %v1597_v24  ;;  %vm1798_vm8 = vcmask 41984  }
 0x822   :  { %v1606_v12 = vsel %vm1603_vm9, %v1605_v26, %v1601_v18  ;;  %v1616_v0 = vsel %vm1615_vm12, %v2042_v7, %v1612_v62 }
 0x823   :  { %v1626_v28 = vmul.f32 %v1624_v19, %v1606_v12  ;;  %v1621_v34 = vsel %vm1618_vm13, %v1620_v15, %v1616_v0 }
 0x824   :  { %v1629_v27 = vsub.f32 1.0, %v1621_v34  ;;  %v1633_v40 = vmul.f32 %v1631_v35, %v1621_v34 }
 0x825   :  { %v1627_v33 = vadd.f32 %v1626_v28, %v2625_v45 }
 0x827   :  { %2043 = vtanh.f32 %v1627_v33 }
 0x82d   :  { %v2044_v38 = vpop.eup %2043 }
 0x82e   :  { %v1630_v39 = vmul.f32 %v2044_v38, %v1629_v27 }
 0x830   :  { %v2672_v41 = vadd.f32 %v1633_v40, %v1630_v39 }
 0x832   :  { %v1636_v42 = vrot.slane %v2672_v41, 4  ;;  %v1755_v62 = vrot.slane %v2672_v41, 6 }
 0x834   :  { %1935 = vmatmul.msk.f32.vlgmr.msra.gmra.mxu1 %vm790_vm7, %v1636_v42  ;;  %1937 = vmatmul.msk.f32.vlgmr.msra.gmra.mxu2 %vm790_vm7, %v1636_v42  ;;  %v2680_v43 = vmax.f32 %v1514_v54, %v1636_v42 }
 0x835   :  { %1939 = vmatmul.msk.f32.vlgmr.msra.gmra.mxu3 %vm790_vm7, %v1636_v42 }
 0x8b1   :  { %v1658_v44 = vpop.f32.mrf.mxu1 }
 0x8b2   :  { %v1659_v46 = vadd.f32 %v1658_v44, %v2500_v22  ;;  %v670_v22 = vld [vmem:[%s2711_s3 + $0x48] sm:$0x1] }
 0x8b3   :  { %v1770_v54 = vrot.slane %v670_v22, 7 }
 0x8b4   :  { %v1703_v31 = vrot.slane %v1659_v46, 2 }
 0x8b6   :  { %v1707_v47 = vadd.f32 %v1703_v31, %v2495_v30  ;;  %v668_v30 = vld [vmem:[%s2711_s3 + $0x18] sm:$0x80] }
 0x8b7   :  { %v1678_v49 = vpop.f32.mrf.mxu2  ;;  %v1767_v57 = vrot.slane %v668_v30, 7 }
 0x8b8   :  { %v1940_v50 = vmul.f32 -1.442695, %v1707_v47  ;;  %v1679_v51 = vadd.f32 %v1678_v49, %v2506_v36  ;;  %v1768_v36 = vrot.slane %v669_v23, 7  ;;  %v1698_v53 = vpop.f32.mrf.mxu3 }
 0x8b9   :  { %v1699_v3 = vadd.f32 %v1698_v53, %v2512_v48 }
 0x8ba   :  { %2045 = vpow2.f32 %v1940_v50  ;;  %v1704_v37 = vrot.slane %v1679_v51, 2  ;;  %v1771_v58 = vsel %vm1766_vm14, %v1768_v36, %v1770_v54  ;;  %v1769_v59 = vsel %vm1766_vm14, %v1767_v57, %v1768_v36 }
 0x8bb   :  { %1942 = vmatpush.msk.msra.mxu0 %vm272_vm3, %v1771_v58  ;;  %v1748_v6 = vrot.slane %v1699_v3, 2 }
 0x8bc   :  { %v1708_v55 = vadd.f32 %v1704_v37, %v2492_v21 }
 0x8bd   :  { %1793 = vmatpush.msra.mxu0 %v1769_v59 }
 0x8be   :  { %v1941_v56 = vmul.f32 -1.442695, %v1708_v55 }
 0x8c0   :  { %v2046_v52 = vpop.eup %2045  ;;  %2047 = vpow2.f32 %v1941_v56 }
 0x8c1   :  { %v1715_v21 = vadd.f32 1.0, %v2046_v52 }
 0x8c3   :  { %2049 = vrcp.f32 %v1715_v21  ;;  %v1728_v29 = vand.u32 2147483648, %v1715_v21  ;;  %v1726_v5 = vand.u32 2147483647, %v1715_v21  ;;  %vm1722_vm0 = vweird.f32 %v1715_v21 }
 0x8c5   :  { %v1729_v13 = vor.u32 1.1754944e-38, %v1728_v29  ;;  %vm1727_vm3 = vcmp.eq.f32.partialorder %v1726_v5, 8.507059e+37 }
 0x8c6   :  { %v2048_v60 = vpop.eup %2047 }
 0x8c7   :  { %v1716_v61 = vadd.f32 1.0, %v2048_v60 }
 0x8c9   :  { %v2050_v20 = vpop.eup %2049  ;;  %2051 = vrcp.f32 %v1716_v61  ;;  %v1743_v25 = vand.u32 2147483648, %v1716_v61  ;;  %v1741_v24 = vand.u32 2147483647, %v1716_v61  ;;  %vm1737_vm4 = vweird.f32 %v1716_v61 }
 0x8ca   :  { %v1718_v1 = vmul.f32 %v2050_v20, %v1715_v21  ;;  %vm1723_vm15 = vweird.f32 %v2050_v20 }
 0x8cb   :  { %vm1724_vm1 = vmor %vm1722_vm0, %vm1723_vm15  ;;  %v1744_v19 = vor.u32 1.1754944e-38, %v1743_v25  ;;  %vm1742_vm6 = vcmp.eq.f32.partialorder %v1741_v24, 8.507059e+37 }
 0x8cc   :  { %v1719_v2 = vsub.f32 1.0, %v1718_v1 }
 0x8ce   :  { %v1720_v4 = vmul.f32 %v2050_v20, %v1719_v2 }
 0x8cf   :  { %v2052_v7 = vpop.eup %2051 }
 0x8d0   :  { %v1733_v8 = vmul.f32 %v2052_v7, %v1716_v61  ;;  %v1721_v10 = vadd.f32 %v2050_v20, %v1720_v4  ;;  %vm1738_vm2 = vweird.f32 %v2052_v7 }
 0x8d1   :  { %vm1739_vm5 = vmor %vm1737_vm4, %vm1738_vm2 }
 0x8d2   :  { %v1734_v14 = vsub.f32 1.0, %v1733_v8  ;;  %v1725_v16 = vsel %vm1724_vm1, %v2050_v20, %v1721_v10 }
 0x8d3   :  { %v1730_v9 = vsel %vm1727_vm3, %v1729_v13, %v1725_v16 }
 0x8d4   :  { %v1735_v17 = vmul.f32 %v2052_v7, %v1734_v14  ;;  %v1750_v63 = vmul.f32 %v1748_v6, %v1730_v9 }
 0x8d6   :  { %v1736_v48 = vadd.f32 %v2052_v7, %v1735_v17  ;;  %v1751_v26 = vadd.f32 %v1750_v63, %v2625_v45  ;;  %v671_v45 = vld [vmem:[%s2711_s3 + $0x49] ss:$0 sm:$0xff] }
 0x8d8   :  { %v1740_v18 = vsel %vm1739_vm5, %v2052_v7, %v1736_v48  ;;  %2053 = vtanh.f32 %v1751_v26 }
 0x8d9   :  { %v1745_v12 = vsel %vm1742_vm6, %v1744_v19, %v1740_v18 }
 0x8da   :  { %v1753_v28 = vsub.f32 1.0, %v1745_v12  ;;  %v1757_v33 = vmul.f32 %v1755_v62, %v1745_v12 }
 0x8de   :  { %v2054_v11 = vpop.eup %2053 }
 0x8df   :  { %v1754_v32 = vmul.f32 %v2054_v11, %v1753_v28 }
 0x8e1   :  { %v1758_v0 = vadd.f32 %v1757_v33, %v1754_v32 }
 0x8e3   :  { %v1760_v15 = vrot.slane %v1758_v0, 6 }
 0x8e5   :  { %v1762_v34 = vmax.f32 %v2680_v43, %v1760_v15 }
 0x8e7   :  { %1943 = vmatmul.msk.f32.vlgmr.msra.gmra.mxu0 %vm790_vm7, %v1762_v34 }
 0x964   :  { %v1795_v35 = vpop.f32.mrf.mxu0 }
 0x965   :  { %v1796_v27 = vadd.f32 %v1795_v35, %v671_v45 }
 0x967   :  { %1799 = vst.msk [vmem:[#allocation2] sm:$0x3] %vm1798_vm8, %v1796_v27 }
 0x968   :  { %1810 = dma.vmem_to_hbm [thread:$0]  %s1806_s14, 32, %s1808_s17, [#allocation3]  }
 0x969   :  { %2079 = dma.done.wait [#allocation3], 32  }
 0x96a   :  { %2080 = vsyncadd [#allocation3], 4294967264 }
 0x96b   :  { %1815 = vsyncpa [#allocation3], 1 }

</bundles_post_ra>
